<compile_context>
chip_gen: v6e
topology: v6e:2x2x1
jax: 0.10.0
libtpu: 0.0.40
codegen_flags: <defaults>
</compile_context>

<pallas_src>
import functools
import math

import jax
import jax.numpy as jnp
from jax import lax
from jax.experimental import pallas as pl
from jax.experimental.pallas import tpu as pltpu

LANE = 128     # channel dims padded to a multiple of the TPU lane width
SUBLANE = 8    # padded image width rounded up so in-kernel reshapes are aligned


def _round_up(x, m):
    return (x + m - 1) // m * m


def _pad_to(a, shape):
    return jnp.pad(a, [(0, s - d) for d, s in zip(a.shape, shape)])


# ---------------------------------------------------------------------------
# Fused kernel: one (batch, row-tile) block of the whole inverted residual.
# ---------------------------------------------------------------------------
def _fused_block_kernel(*refs, stride, tile_out_rows, out_cols, hp, w_orig,
                        has_expand, use_res):
    if has_expand:
        (x_ref, ew_ref, eb_ref,
         dw_ref, db_ref,
         rw_ref, rb_ref, o_ref) = refs
    else:
        (x_ref, dw_ref, db_ref,
         rw_ref, rb_ref, o_ref) = refs

    t = pl.program_id(1)
    THo, Wo, W = tile_out_rows, out_cols, w_orig
    THi = (THo - 1) * stride + 3            # input rows incl. 3x3 halo
    row0 = t * (THo * stride)               # first padded-input row of the tile
    Wp = x_ref.shape[1]
    Cip = x_ref.shape[2]
    Chp = dw_ref.shape[2]

    # Load the input tile once; it is reused by stage 1 and the residual.
    x_tile = x_ref[pl.ds(row0, THi), :, :]                 # (THi, Wp, Cip)

    # ---- stage 1: 1x1 expansion conv (BN scale folded into weights) + SiLU --
    if has_expand:
        h = jnp.dot(x_tile.reshape(THi * Wp, Cip), ew_ref[...],
                    preferred_element_type=jnp.float32)    # (THi*Wp, Chp)
        h = h + eb_ref[...]
        h = h * jax.nn.sigmoid(h)
        h = h.reshape(THi, Wp, Chp)
        # The depthwise conv below assumes a ZERO border (padding=1); bias+SiLU
        # made the border pixels non-zero, so re-zero halo / padding pixels.
        li = lax.broadcasted_iota(jnp.int32, (THi, Wp, 1), 0) + row0
        cj = lax.broadcasted_iota(jnp.int32, (THi, Wp, 1), 1)
        valid = (li > 0) & (li < hp - 1) & (cj > 0) & (cj < W + 1)
        h = jnp.where(valid, h, 0.0)
    else:
        h = x_tile.astype(jnp.float32)      # border already zero (wrapper pad)

    # ---- stage 2: depthwise 3x3 conv (BN scale folded) + bias + SiLU (VPU) --
    rows_s1 = THi - 2
    w = dw_ref[...]
    acc = jnp.zeros((rows_s1, W, Chp), jnp.float32)
    for di in range(3):
        for dj in range(3):
            acc = acc + h[di:di + rows_s1, dj:dj + W, :] * w[di, dj, :]
    if stride == 2:
        acc = acc[::2, ::2, :]              # single subsample, not 9 strided slices
    y = acc + db_ref[...]
    y = y * jax.nn.sigmoid(y)               # (THo, Wo, Chp)

    # ---- stage 3: 1x1 reduction conv (BN folded) + bias (+ fused residual) --
    out = jnp.dot(y.reshape(THo * Wo, Chp), rw_ref[...],
                  preferred_element_type=jnp.float32)       # (THo*Wo, Cop)
    out = out + rb_ref[...]
    if use_res:
        res = x_tile[1:1 + THo, 1:1 + Wo, :]    # reuse loaded tile, no 2nd stream
        out = out + res.reshape(THo * Wo, Cip).astype(jnp.float32)

    o_ref[...] = out.reshape(THo, Wo, out.shape[-1]).astype(o_ref.dtype)


# ---------------------------------------------------------------------------
# Wrapper: layout glue, channel padding, BN folding, tile selection, pallas_call.
# ---------------------------------------------------------------------------
def mobilenetv2_block(x_nchw, params, *, stride, expand_ratio, tile_out_rows=None):
    assert stride in (1, 2)
    x = jnp.transpose(x_nchw, (0, 2, 3, 1))            # NCHW -> NHWC
    N, H, W, Cin = x.shape
    has_expand = expand_ratio != 1
    Chid = params["dw_w"].shape[-1]
    Cout = params["red_w"].shape[1]
    use_res = (stride == 1) and (Cin == Cout)

    Ho = (H + 2 - 3) // stride + 1
    Wo = (W + 2 - 3) // stride + 1

    # Lane-dense channel padding (zero padding channels stay exactly zero
    # through every stage, so results are untouched; sliced off at the end).
    Cip = _round_up(Cin, LANE)
    Chp = _round_up(Chid, LANE)
    Cop = _round_up(Cout, LANE)

    # 1-px zero border on the NARROW input only (the wide hidden tensor is
    # padded in-kernel); width rounded to a sublane multiple for aligned reshapes.
    Hp = H + 2
    Wp = _round_up(W + 2, SUBLANE)
    xp = jnp.pad(x, ((0, 0), (1, 1), (1, Wp - W - 1), (0, Cip - Cin)))

    # Fold inference-BN scale into the conv weights (done once, outside the
    # kernel): conv(x, W)*s + b == conv(x, W*s) + b.  Shifts stay as biases.
    dw_wf = params["dw_w"] * params["dw_scale"][None, None, :]
    dw_w = _pad_to(dw_wf, (3, 3, Chp))
    dw_b = _pad_to(params["dw_shift"].reshape(1, -1), (1, Chp))
    red_wf = params["red_w"] * params["red_scale"][None, :]
    red_w = _pad_to(red_wf, (Chp, Cop))
    red_b = _pad_to(params["red_shift"].reshape(1, -1), (1, Cop))

    # Output-row tile: largest divisor of Ho that keeps the fused intermediates
    # under a conservative VMEM budget (fits v7x's smaller VMEM).
    bytes_per_row = 4 * (stride * Wp * (Cip + 2 * Chp) + Wo * (2 * Chp + Cop))
    if tile_out_rows is None:
        cap = max(1, min(256, (8 << 20) // max(bytes_per_row, 1)))
        tile_out_rows = 1
        for d in range(1, Ho + 1):
            if Ho % d == 0 and d <= cap:
                tile_out_rows = d
    assert Ho % tile_out_rows == 0, "tile_out_rows must divide output height"
    n_tiles = Ho // tile_out_rows

    in_specs = [pl.BlockSpec((None, Hp, Wp, Cip), lambda n, t: (n, 0, 0, 0))]
    args = [xp]
    if has_expand:
        exp_wf = params["exp_w"] * params["exp_scale"][None, :]
        exp_w = _pad_to(exp_wf, (Cip, Chp))
        exp_b = _pad_to(params["exp_shift"].reshape(1, -1), (1, Chp))
        in_specs += [pl.BlockSpec((Cip, Chp), lambda n, t: (0, 0)),
                     pl.BlockSpec((1, Chp), lambda n, t: (0, 0))]
        args += [exp_w, exp_b]
    in_specs += [pl.BlockSpec((3, 3, Chp), lambda n, t: (0, 0, 0)),
                 pl.BlockSpec((1, Chp), lambda n, t: (0, 0)),
                 pl.BlockSpec((Chp, Cop), lambda n, t: (0, 0)),
                 pl.BlockSpec((1, Cop), lambda n, t: (0, 0))]
    args += [dw_w, dw_b, red_w, red_b]

    kernel = functools.partial(
        _fused_block_kernel, stride=stride, tile_out_rows=tile_out_rows,
        out_cols=Wo, hp=Hp, w_orig=W, has_expand=has_expand, use_res=use_res)

    out_p = pl.pallas_call(
        kernel,
        out_shape=jax.ShapeDtypeStruct((N, Ho, Wo, Cop), x.dtype),
        grid=(N, n_tiles),
        in_specs=in_specs,
        out_specs=pl.BlockSpec((None, tile_out_rows, Wo, Cop),
                               lambda n, t: (n, t, 0, 0)),
        compiler_params=pltpu.CompilerParams(
            dimension_semantics=("parallel", "arbitrary"),
            vmem_limit_bytes=48 * 1024 * 1024),
    )(*args)

    out = out_p[..., :Cout]                            # drop lane padding
    # TODO(synk): bf16 activations/weights (f32 accum) would further cut HBM
    # traffic and double MXU rate on v6e/v7x; kept f32 for exact parity here.
    return jnp.transpose(out, (0, 3, 1, 2))            # NHWC -> NCHW


# ---------------------------------------------------------------------------
# Deterministic parameter init (BatchNorm folded into scale/shift)
# ---------------------------------------------------------------------------
def make_bn(key, c, eps=1e-5):
    k1, k2, k3, k4 = jax.random.split(key, 4)
    gamma = jax.random.uniform(k1, (c,), jnp.float32, 0.5, 1.5)
    beta = 0.1 * jax.random.normal(k2, (c,), jnp.float32)
    mean = 0.1 * jax.random.normal(k3, (c,), jnp.float32)
    var = jax.random.uniform(k4, (c,), jnp.float32, 0.5, 1.5)
    scale = gamma / jnp.sqrt(var + eps)
    shift = beta - mean * scale
    return scale, shift


def init_params(key, input_dim, output_dim, expand_ratio):
    hidden = int(round(input_dim * expand_ratio))
    ks = jax.random.split(key, 6)
    params = {}
    if expand_ratio != 1:
        params["exp_w"] = (jax.random.normal(ks[0], (input_dim, hidden), jnp.float32)
                           / math.sqrt(input_dim))
        params["exp_scale"], params["exp_shift"] = make_bn(ks[1], hidden)
    params["dw_w"] = (jax.random.normal(ks[2], (3, 3, hidden), jnp.float32)
                      / math.sqrt(9.0))
    params["dw_scale"], params["dw_shift"] = make_bn(ks[3], hidden)
    params["red_w"] = (jax.random.normal(ks[4], (hidden, output_dim), jnp.float32)
                       / math.sqrt(hidden))
    params["red_scale"], params["red_shift"] = make_bn(ks[5], output_dim)
    return params


# ---------------------------------------------------------------------------
# Pure-JAX reference (lax conv) for correctness check
# ---------------------------------------------------------------------------
def reference_block(x_nchw, params, *, stride, expand_ratio):
    x = jnp.transpose(x_nchw, (0, 2, 3, 1))
    N, H, W, Cin = x.shape
    Chid = params["dw_w"].shape[-1]
    Cout = params["red_w"].shape[1]
    dn = ("NHWC", "HWIO", "NHWC")

    def bn(y, s, b):
        return y * s.reshape(1, 1, 1, -1) + b.reshape(1, 1, 1, -1)

    h = x
    if expand_ratio != 1:
        h = lax.conv_general_dilated(h, params["exp_w"].reshape(1, 1, Cin, Chid),
                                     (1, 1), "VALID", dimension_numbers=dn)
        h = bn(h, params["exp_scale"], params["exp_shift"])
        h = h * jax.nn.sigmoid(h)
    h = lax.conv_general_dilated(h, params["dw_w"].reshape(3, 3, 1, Chid),
                                 (stride, stride), ((1, 1), (1, 1)),
                                 dimension_numbers=dn, feature_group_count=Chid)
    h = bn(h, params["dw_scale"], params["dw_shift"])
    h = h * jax.nn.sigmoid(h)
    h = lax.conv_general_dilated(h, params["red_w"].reshape(1, 1, Chid, Cout),
                                 (1, 1), "VALID", dimension_numbers=dn)
    h = bn(h, params["red_scale"], params["red_shift"])
    if stride == 1 and Cin == Cout:
        h = h + x
    return jnp.transpose(h, (0, 3, 1, 2))


if __name__ == "__main__":
    key = jax.random.PRNGKey(0)
    kx1, kp1, kx2, kp2, kx3, kp3 = jax.random.split(key, 6)

    # Config 1: expansion + residual (stride=1, expand_ratio=4), NCHW input,
    # forced 2 row-tiles per image so the halo/H-tiling path is exercised.
    N, Cin, Cout, HW = 2, 4, 4, 16
    x1 = jax.random.normal(kx1, (N, Cin, HW, HW), jnp.float32)
    p1 = init_params(kp1, Cin, Cout, 4)
    out1 = jax.block_until_ready(
        mobilenetv2_block(x1, p1, stride=1, expand_ratio=4, tile_out_rows=8))
    ref1 = jax.block_until_ready(reference_block(x1, p1, stride=1, expand_ratio=4))
    assert out1.shape == (N, Cout, HW, HW), out1.shape
    assert jnp.allclose(out1, ref1, atol=1e-4, rtol=1e-4), \
        float(jnp.abs(out1 - ref1).max())

    # Config 2: expand_ratio == 1 path (no exp_1x1), still residual.
    x2 = jax.random.normal(kx2, (N, Cin, HW, HW), jnp.float32)
    p2 = init_params(kp2, Cin, Cout, 1)
    out2 = jax.block_until_ready(
        mobilenetv2_block(x2, p2, stride=1, expand_ratio=1))
    ref2 = jax.block_until_ready(reference_block(x2, p2, stride=1, expand_ratio=1))
    assert out2.shape == (N, Cout, HW, HW), out2.shape
    assert jnp.allclose(out2, ref2, atol=1e-4, rtol=1e-4), \
        float(jnp.abs(out2 - ref2).max())

    # Config 3: stride=2 downsampling path (no residual), with expansion.
    Cout3 = 8
    x3 = jax.random.normal(kx3, (N, Cin, HW, HW), jnp.float32)
    p3 = init_params(kp3, Cin, Cout3, 2)
    out3 = jax.block_until_ready(
        mobilenetv2_block(x3, p3, stride=2, expand_ratio=2))
    ref3 = jax.block_until_ready(reference_block(x3, p3, stride=2, expand_ratio=2))
    assert out3.shape == (N, Cout3, HW // 2, HW // 2), out3.shape
    assert jnp.allclose(out3, ref3, atol=1e-4, rtol=1e-4), \
        float(jnp.abs(out3 - ref3).max())

    print("KERNEL_OK")
</pallas_src>

<mosaic_0001>
module attributes {stable_mosaic.version = 11 : i64} {
  func.func @_fused_block_kernel(%arg0: i32, %arg1: i32, %arg2: memref<1x18x24x128xf32, #tpu.memory_space<vmem>>, %arg3: memref<128x128xf32, #tpu.memory_space<vmem>>, %arg4: memref<1x128xf32, #tpu.memory_space<vmem>>, %arg5: memref<3x3x128xf32, #tpu.memory_space<vmem>>, %arg6: memref<1x128xf32, #tpu.memory_space<vmem>>, %arg7: memref<128x128xf32, #tpu.memory_space<vmem>>, %arg8: memref<1x128xf32, #tpu.memory_space<vmem>>, %arg9: memref<1x8x16x128xf32, #tpu.memory_space<vmem>>) attributes {dimension_semantics = [#tpu.dimension_semantics<parallel>, #tpu.dimension_semantics<arbitrary>], iteration_bounds = array<i64: 2, 2>, scalar_prefetch = 0 : i64, scratch_operands = 0 : i64, tpu.core_type = #tpu.core_type<tc>, window_params = [{transform_indices = @transform_0, window_bounds = array<i64: 1, 18, 24, 128>}, {pipeline_mode = #tpu.pipeline_mode<synchronous>, transform_indices = @transform_1, window_bounds = array<i64: 128, 128>}, {pipeline_mode = #tpu.pipeline_mode<synchronous>, transform_indices = @transform_2, window_bounds = array<i64: 1, 128>}, {pipeline_mode = #tpu.pipeline_mode<synchronous>, transform_indices = @transform_3, window_bounds = array<i64: 3, 3, 128>}, {pipeline_mode = #tpu.pipeline_mode<synchronous>, transform_indices = @transform_4, window_bounds = array<i64: 1, 128>}, {pipeline_mode = #tpu.pipeline_mode<synchronous>, transform_indices = @transform_5, window_bounds = array<i64: 128, 128>}, {pipeline_mode = #tpu.pipeline_mode<synchronous>, transform_indices = @transform_6, window_bounds = array<i64: 1, 128>}, {transform_indices = @transform_7, window_bounds = array<i64: 1, 8, 16, 128>}]} {
    %c8_i32 = arith.constant 8 : i32
    %0 = arith.muli %arg1, %c8_i32 : i32
    %c0 = arith.constant 0 : index
    %1 = arith.index_cast %0 : i32 to index
    %c0_0 = arith.constant 0 : index
    %c0_1 = arith.constant 0 : index
    %2 = vector.load %arg2[%c0, %1, %c0_0, %c0_1] : memref<1x18x24x128xf32, #tpu.memory_space<vmem>>, vector<1x10x24x128xf32>
    %3 = vector.shape_cast %2 : vector<1x10x24x128xf32> to vector<10x24x128xf32>
    %4 = vector.shape_cast %3 : vector<10x24x128xf32> to vector<240x128xf32>
    %c0_2 = arith.constant 0 : index
    %c0_3 = arith.constant 0 : index
    %5 = vector.load %arg3[%c0_2, %c0_3] : memref<128x128xf32, #tpu.memory_space<vmem>>, vector<128x128xf32>
    %cst = arith.constant dense<0.000000e+00> : vector<240x128xf32>
    %6 = tpu.matmul %4, %5, %cst {dimension_numbers = #tpu.dot_dimension_numbers<[1], [0], [0], [1], [0, 0, 1, 1], [], []>} : vector<240x128xf32>, vector<128x128xf32>, vector<240x128xf32> -> vector<240x128xf32>
    %c0_4 = arith.constant 0 : index
    %c0_5 = arith.constant 0 : index
    %7 = vector.load %arg4[%c0_4, %c0_5] : memref<1x128xf32, #tpu.memory_space<vmem>>, vector<1x128xf32>
    %8 = vector.broadcast %7 : vector<1x128xf32> to vector<240x128xf32>
    %9 = arith.addf %6, %8 : vector<240x128xf32>
    %10 = arith.negf %9 : vector<240x128xf32>
    %11 = math.exp %10 : vector<240x128xf32>
    %cst_6 = arith.constant 1.000000e+00 : f32
    %12 = vector.broadcast %cst_6 : f32 to vector<240x128xf32>
    %13 = arith.addf %12, %11 : vector<240x128xf32>
    %14 = arith.divf %12, %13 : vector<240x128xf32>
    %15 = arith.mulf %9, %14 : vector<240x128xf32>
    %16 = vector.shape_cast %15 : vector<240x128xf32> to vector<10x24x128xf32>
    %17 = tpu.iota {dimensions = array<i32: 0>} : vector<10x24x1xi32>
    %18 = vector.broadcast %0 : i32 to vector<10x24x1xi32>
    %19 = arith.addi %17, %18 : vector<10x24x1xi32>
    %20 = tpu.iota {dimensions = array<i32: 1>} : vector<10x24x1xi32>
    %c0_i32 = arith.constant 0 : i32
    %21 = vector.broadcast %c0_i32 : i32 to vector<10x24x1xi32>
    %22 = arith.cmpi sgt, %19, %21 : vector<10x24x1xi32>
    %c17_i32 = arith.constant 17 : i32
    %23 = vector.broadcast %c17_i32 : i32 to vector<10x24x1xi32>
    %24 = arith.cmpi slt, %19, %23 : vector<10x24x1xi32>
    %25 = arith.andi %22, %24 : vector<10x24x1xi1>
    %c0_i32_7 = arith.constant 0 : i32
    %26 = vector.broadcast %c0_i32_7 : i32 to vector<10x24x1xi32>
    %27 = arith.cmpi sgt, %20, %26 : vector<10x24x1xi32>
    %28 = arith.andi %25, %27 : vector<10x24x1xi1>
    %c17_i32_8 = arith.constant 17 : i32
    %29 = vector.broadcast %c17_i32_8 : i32 to vector<10x24x1xi32>
    %30 = arith.cmpi slt, %20, %29 : vector<10x24x1xi32>
    %31 = arith.andi %28, %30 : vector<10x24x1xi1>
    %cst_9 = arith.constant 0.000000e+00 : f32
    %32 = vector.shape_cast %31 : vector<10x24x1xi1> to vector<10x24x1xi1>
    %33 = vector.broadcast %32 : vector<10x24x1xi1> to vector<10x24x128xi1>
    %34 = vector.broadcast %cst_9 : f32 to vector<10x24x128xf32>
    %35 = arith.select %33, %16, %34 : vector<10x24x128xi1>, vector<10x24x128xf32>
    %c0_10 = arith.constant 0 : index
    %c0_11 = arith.constant 0 : index
    %c0_12 = arith.constant 0 : index
    %36 = vector.load %arg5[%c0_10, %c0_11, %c0_12] : memref<3x3x128xf32, #tpu.memory_space<vmem>>, vector<3x3x128xf32>
    %cst_13 = arith.constant 0.000000e+00 : f32
    %37 = vector.broadcast %cst_13 : f32 to vector<8x16x128xf32>
    %38 = vector.extract_strided_slice %35 {offsets = [0, 0, 0], sizes = [8, 16, 128], strides = [1, 1, 1]} : vector<10x24x128xf32> to vector<8x16x128xf32>
    %39 = vector.extract_strided_slice %36 {offsets = [0, 0, 0], sizes = [1, 1, 128], strides = [1, 1, 1]} : vector<3x3x128xf32> to vector<1x1x128xf32>
    %40 = vector.shape_cast %39 : vector<1x1x128xf32> to vector<128xf32>
    %41 = vector.shape_cast %40 : vector<128xf32> to vector<1x1x128xf32>
    %42 = vector.broadcast %41 : vector<1x1x128xf32> to vector<8x16x128xf32>
    %43 = arith.mulf %38, %42 : vector<8x16x128xf32>
    %44 = arith.addf %37, %43 : vector<8x16x128xf32>
    %45 = vector.extract_strided_slice %35 {offsets = [0, 1, 0], sizes = [8, 16, 128], strides = [1, 1, 1]} : vector<10x24x128xf32> to vector<8x16x128xf32>
    %46 = vector.extract_strided_slice %36 {offsets = [0, 1, 0], sizes = [1, 1, 128], strides = [1, 1, 1]} : vector<3x3x128xf32> to vector<1x1x128xf32>
    %47 = vector.shape_cast %46 : vector<1x1x128xf32> to vector<128xf32>
    %48 = vector.shape_cast %47 : vector<128xf32> to vector<1x1x128xf32>
    %49 = vector.broadcast %48 : vector<1x1x128xf32> to vector<8x16x128xf32>
    %50 = arith.mulf %45, %49 : vector<8x16x128xf32>
    %51 = arith.addf %44, %50 : vector<8x16x128xf32>
    %52 = vector.extract_strided_slice %35 {offsets = [0, 2, 0], sizes = [8, 16, 128], strides = [1, 1, 1]} : vector<10x24x128xf32> to vector<8x16x128xf32>
    %53 = vector.extract_strided_slice %36 {offsets = [0, 2, 0], sizes = [1, 1, 128], strides = [1, 1, 1]} : vector<3x3x128xf32> to vector<1x1x128xf32>
    %54 = vector.shape_cast %53 : vector<1x1x128xf32> to vector<128xf32>
    %55 = vector.shape_cast %54 : vector<128xf32> to vector<1x1x128xf32>
    %56 = vector.broadcast %55 : vector<1x1x128xf32> to vector<8x16x128xf32>
    %57 = arith.mulf %52, %56 : vector<8x16x128xf32>
    %58 = arith.addf %51, %57 : vector<8x16x128xf32>
    %59 = vector.extract_strided_slice %35 {offsets = [1, 0, 0], sizes = [8, 16, 128], strides = [1, 1, 1]} : vector<10x24x128xf32> to vector<8x16x128xf32>
    %60 = vector.extract_strided_slice %36 {offsets = [1, 0, 0], sizes = [1, 1, 128], strides = [1, 1, 1]} : vector<3x3x128xf32> to vector<1x1x128xf32>
    %61 = vector.shape_cast %60 : vector<1x1x128xf32> to vector<128xf32>
    %62 = vector.shape_cast %61 : vector<128xf32> to vector<1x1x128xf32>
    %63 = vector.broadcast %62 : vector<1x1x128xf32> to vector<8x16x128xf32>
    %64 = arith.mulf %59, %63 : vector<8x16x128xf32>
    %65 = arith.addf %58, %64 : vector<8x16x128xf32>
    %66 = vector.extract_strided_slice %35 {offsets = [1, 1, 0], sizes = [8, 16, 128], strides = [1, 1, 1]} : vector<10x24x128xf32> to vector<8x16x128xf32>
    %67 = vector.extract_strided_slice %36 {offsets = [1, 1, 0], sizes = [1, 1, 128], strides = [1, 1, 1]} : vector<3x3x128xf32> to vector<1x1x128xf32>
    %68 = vector.shape_cast %67 : vector<1x1x128xf32> to vector<128xf32>
    %69 = vector.shape_cast %68 : vector<128xf32> to vector<1x1x128xf32>
    %70 = vector.broadcast %69 : vector<1x1x128xf32> to vector<8x16x128xf32>
    %71 = arith.mulf %66, %70 : vector<8x16x128xf32>
    %72 = arith.addf %65, %71 : vector<8x16x128xf32>
    %73 = vector.extract_strided_slice %35 {offsets = [1, 2, 0], sizes = [8, 16, 128], strides = [1, 1, 1]} : vector<10x24x128xf32> to vector<8x16x128xf32>
    %74 = vector.extract_strided_slice %36 {offsets = [1, 2, 0], sizes = [1, 1, 128], strides = [1, 1, 1]} : vector<3x3x128xf32> to vector<1x1x128xf32>
    %75 = vector.shape_cast %74 : vector<1x1x128xf32> to vector<128xf32>
    %76 = vector.shape_cast %75 : vector<128xf32> to vector<1x1x128xf32>
    %77 = vector.broadcast %76 : vector<1x1x128xf32> to vector<8x16x128xf32>
    %78 = arith.mulf %73, %77 : vector<8x16x128xf32>
    %79 = arith.addf %72, %78 : vector<8x16x128xf32>
    %80 = vector.extract_strided_slice %35 {offsets = [2, 0, 0], sizes = [8, 16, 128], strides = [1, 1, 1]} : vector<10x24x128xf32> to vector<8x16x128xf32>
    %81 = vector.extract_strided_slice %36 {offsets = [2, 0, 0], sizes = [1, 1, 128], strides = [1, 1, 1]} : vector<3x3x128xf32> to vector<1x1x128xf32>
    %82 = vector.shape_cast %81 : vector<1x1x128xf32> to vector<128xf32>
    %83 = vector.shape_cast %82 : vector<128xf32> to vector<1x1x128xf32>
    %84 = vector.broadcast %83 : vector<1x1x128xf32> to vector<8x16x128xf32>
    %85 = arith.mulf %80, %84 : vector<8x16x128xf32>
    %86 = arith.addf %79, %85 : vector<8x16x128xf32>
    %87 = vector.extract_strided_slice %35 {offsets = [2, 1, 0], sizes = [8, 16, 128], strides = [1, 1, 1]} : vector<10x24x128xf32> to vector<8x16x128xf32>
    %88 = vector.extract_strided_slice %36 {offsets = [2, 1, 0], sizes = [1, 1, 128], strides = [1, 1, 1]} : vector<3x3x128xf32> to vector<1x1x128xf32>
    %89 = vector.shape_cast %88 : vector<1x1x128xf32> to vector<128xf32>
    %90 = vector.shape_cast %89 : vector<128xf32> to vector<1x1x128xf32>
    %91 = vector.broadcast %90 : vector<1x1x128xf32> to vector<8x16x128xf32>
    %92 = arith.mulf %87, %91 : vector<8x16x128xf32>
    %93 = arith.addf %86, %92 : vector<8x16x128xf32>
    %94 = vector.extract_strided_slice %35 {offsets = [2, 2, 0], sizes = [8, 16, 128], strides = [1, 1, 1]} : vector<10x24x128xf32> to vector<8x16x128xf32>
    %95 = vector.extract_strided_slice %36 {offsets = [2, 2, 0], sizes = [1, 1, 128], strides = [1, 1, 1]} : vector<3x3x128xf32> to vector<1x1x128xf32>
    %96 = vector.shape_cast %95 : vector<1x1x128xf32> to vector<128xf32>
    %97 = vector.shape_cast %96 : vector<128xf32> to vector<1x1x128xf32>
    %98 = vector.broadcast %97 : vector<1x1x128xf32> to vector<8x16x128xf32>
    %99 = arith.mulf %94, %98 : vector<8x16x128xf32>
    %100 = arith.addf %93, %99 : vector<8x16x128xf32>
    %c0_14 = arith.constant 0 : index
    %c0_15 = arith.constant 0 : index
    %101 = vector.load %arg6[%c0_14, %c0_15] : memref<1x128xf32, #tpu.memory_space<vmem>>, vector<1x128xf32>
    %102 = vector.shape_cast %101 : vector<1x128xf32> to vector<1x1x128xf32>
    %103 = vector.broadcast %102 : vector<1x1x128xf32> to vector<8x16x128xf32>
    %104 = arith.addf %100, %103 : vector<8x16x128xf32>
    %105 = arith.negf %104 : vector<8x16x128xf32>
    %106 = math.exp %105 : vector<8x16x128xf32>
    %cst_16 = arith.constant 1.000000e+00 : f32
    %107 = vector.broadcast %cst_16 : f32 to vector<8x16x128xf32>
    %108 = arith.addf %107, %106 : vector<8x16x128xf32>
    %109 = arith.divf %107, %108 : vector<8x16x128xf32>
    %110 = arith.mulf %104, %109 : vector<8x16x128xf32>
    %111 = vector.shape_cast %110 : vector<8x16x128xf32> to vector<128x128xf32>
    %c0_17 = arith.constant 0 : index
    %c0_18 = arith.constant 0 : index
    %112 = vector.load %arg7[%c0_17, %c0_18] : memref<128x128xf32, #tpu.memory_space<vmem>>, vector<128x128xf32>
    %cst_19 = arith.constant dense<0.000000e+00> : vector<128x128xf32>
    %113 = tpu.matmul %111, %112, %cst_19 {dimension_numbers = #tpu.dot_dimension_numbers<[1], [0], [0], [1], [0, 0, 1, 1], [], []>} : vector<128x128xf32>, vector<128x128xf32>, vector<128x128xf32> -> vector<128x128xf32>
    %c0_20 = arith.constant 0 : index
    %c0_21 = arith.constant 0 : index
    %114 = vector.load %arg8[%c0_20, %c0_21] : memref<1x128xf32, #tpu.memory_space<vmem>>, vector<1x128xf32>
    %115 = vector.broadcast %114 : vector<1x128xf32> to vector<128x128xf32>
    %116 = arith.addf %113, %115 : vector<128x128xf32>
    %117 = vector.extract_strided_slice %3 {offsets = [1, 1, 0], sizes = [8, 16, 128], strides = [1, 1, 1]} : vector<10x24x128xf32> to vector<8x16x128xf32>
    %118 = vector.shape_cast %117 : vector<8x16x128xf32> to vector<128x128xf32>
    %119 = arith.addf %116, %118 : vector<128x128xf32>
    %120 = vector.shape_cast %119 : vector<128x128xf32> to vector<8x16x128xf32>
    %c0_22 = arith.constant 0 : index
    %c0_23 = arith.constant 0 : index
    %c0_24 = arith.constant 0 : index
    %c0_25 = arith.constant 0 : index
    %121 = vector.load %arg9[%c0_22, %c0_23, %c0_24, %c0_25] : memref<1x8x16x128xf32, #tpu.memory_space<vmem>>, vector<1x8x16x128xf32>
    %122 = vector.shape_cast %121 : vector<1x8x16x128xf32> to vector<8x16x128xf32>
    %123 = vector.shape_cast %120 : vector<8x16x128xf32> to vector<1x8x16x128xf32>
    tpu.vector_store %arg9[%c0_22, %c0_23, %c0_24, %c0_25], %123 {strides = array<i32>} : memref<1x8x16x128xf32, #tpu.memory_space<vmem>>, vector<1x8x16x128xf32>,
    return
  }
  func.func @transform_0(%arg0: i32, %arg1: i32) -> (i32, i32, i32, i32) {
    %c0_i32 = arith.constant 0 : i32
    %c0_i32_0 = arith.constant 0 : i32
    %c0_i32_1 = arith.constant 0 : i32
    %c0_i32_2 = arith.constant 0 : i32
    return %arg0, %c0_i32, %c0_i32_0, %c0_i32_1 : i32, i32, i32, i32
  }
  func.func @transform_1(%arg0: i32, %arg1: i32) -> (i32, i32) {
    %c0_i32 = arith.constant 0 : i32
    %c0_i32_0 = arith.constant 0 : i32
    %c0_i32_1 = arith.constant 0 : i32
    return %c0_i32, %c0_i32_0 : i32, i32
  }
  func.func @transform_2(%arg0: i32, %arg1: i32) -> (i32, i32) {
    %c0_i32 = arith.constant 0 : i32
    %c0_i32_0 = arith.constant 0 : i32
    %c0_i32_1 = arith.constant 0 : i32
    return %c0_i32, %c0_i32_0 : i32, i32
  }
  func.func @transform_3(%arg0: i32, %arg1: i32) -> (i32, i32, i32) {
    %c0_i32 = arith.constant 0 : i32
    %c0_i32_0 = arith.constant 0 : i32
    %c0_i32_1 = arith.constant 0 : i32
    %c0_i32_2 = arith.constant 0 : i32
    return %c0_i32, %c0_i32_0, %c0_i32_1 : i32, i32, i32
  }
  func.func @transform_4(%arg0: i32, %arg1: i32) -> (i32, i32) {
    %c0_i32 = arith.constant 0 : i32
    %c0_i32_0 = arith.constant 0 : i32
    %c0_i32_1 = arith.constant 0 : i32
    return %c0_i32, %c0_i32_0 : i32, i32
  }
  func.func @transform_5(%arg0: i32, %arg1: i32) -> (i32, i32) {
    %c0_i32 = arith.constant 0 : i32
    %c0_i32_0 = arith.constant 0 : i32
    %c0_i32_1 = arith.constant 0 : i32
    return %c0_i32, %c0_i32_0 : i32, i32
  }
  func.func @transform_6(%arg0: i32, %arg1: i32) -> (i32, i32) {
    %c0_i32 = arith.constant 0 : i32
    %c0_i32_0 = arith.constant 0 : i32
    %c0_i32_1 = arith.constant 0 : i32
    return %c0_i32, %c0_i32_0 : i32, i32
  }
  func.func @transform_7(%arg0: i32, %arg1: i32) -> (i32, i32, i32, i32) {
    %c0_i32 = arith.constant 0 : i32
    %c0_i32_0 = arith.constant 0 : i32
    %c0_i32_1 = arith.constant 0 : i32
    return %arg0, %arg1, %c0_i32, %c0_i32_0 : i32, i32, i32, i32
  }
}

</mosaic_0001>

<bundles_post_ra>
// kernel: tpu_custom_call.1
= control target key start
LH: loop header
LB: loop body
LE: loop exit
PB: predicated region body
PF: predicated region fallthrough
CT: control target
= control target key end

     0   :  { %s5278_s0 = inlined_call_operand.hbm [shape: f32[2,18,24,128], index: 0, kind: input, shape index: {}]   ;;  %s5279_s1 = inlined_call_operand.hbm [shape: f32[128,128], index: 1, kind: input, shape index: {}]   ;;  %s5280_s2 = inlined_call_operand.vmem [shape: f32[1,128], index: 2, kind: input, shape index: {}]   ;;  %s5281_s3 = inlined_call_operand.hbm [shape: f32[3,3,128], index: 3, kind: input, shape index: {}]   ;;  %s5282_s4 = inlined_call_operand.vmem [shape: f32[1,128], index: 4, kind: input, shape index: {}]   ;;  %s5283_s5 = inlined_call_operand.hbm [shape: f32[128,128], index: 5, kind: input, shape index: {}]   ;;  %s5284_s6 = inlined_call_operand.vmem [shape: f32[1,128], index: 6, kind: input, shape index: {}]   ;;  %s5285_s7 = inlined_call_operand.hbm [shape: f32[2,16,16,128], index: 7, kind: output, shape index: {}]  }
   0x1   :  { %5368 = sst [smem:[#allocation79_spill]] %s5279_s1 }
   0x2   :  { %5369 = sst [smem:[#allocation80_spill]] %s5281_s3 }
   0x3   :  { %5370 = sst [smem:[#allocation81_spill]] %s5283_s5 }
   0x4   :  { %5371 = sst [smem:[#allocation82_spill]] %s5285_s7 }
   0x5   :  { %12 = vsyncpa [#allocation3], 0 }
   0x6   :  { %14 = vsyncpa [#allocation3 + $0x1], 0 }
   0x7   :  { %15 = vsyncpa [#allocation6], 0 }
   0x8   :  { %16 = vsyncpa [#allocation9], 0 }
   0x9   :  { %17 = vsyncpa [#allocation4], 0 }
   0xa   :  { %19 = vsyncpa [#allocation4 + $0x1], 0  ;;  %s3365_s24 = smov 0   ;;  %s3367_s25 = smov 0  }
   0xb   :  { %s3369_s26 = smov 0   ;;  %s3371_s27 = smov 0  }
   0xc   :  { %s3373_s28 = smov 0   ;;  %s3375_s29 = smov 0  }
   0xd   :  { %s3377_s30 = smov 0   ;;  %s3379_s8 = smov 0  }
   0xe   :  { %s3381_s9 = smov 0   ;;  %s3383_s10 = smov 0  }
   0xf   :  { %s3385_s11 = smov 0  }
  0x10 LB: > { %5372 = sst [smem:[#allocation15_spill]] %s3272_s24  ;;  %s2444_s12 = sadd.s32 4294967295, %s3312_s11   ;;  %s3312_s11 = sphi %s3385_s11, %s25_s11   ;;  %s3308_s10 = sphi %s3383_s10, %s5669_s10   ;;  %s3304_s9 = sphi %s3381_s9, %s5660_s9   ;;  %s3300_s8 = sphi %s3379_s8, %s5668_s8   ;;  %s3296_s30 = sphi %s3377_s30, %s5659_s30   ;;  %s3292_s29 = sphi %s3375_s29, %s5667_s29   ;;  %s3288_s28 = sphi %s3373_s28, %s5666_s28   ;;  %s3284_s27 = sphi %s3371_s27, %s5665_s27   ;;  %s3280_s26 = sphi %s3369_s26, %s5664_s26   ;;  %s3276_s25 = sphi %s3367_s25, %s5663_s25   ;;  %s3272_s24 = sphi %s3365_s24, %s5662_s24  }
  0x11   : > { %5373 = sst [smem:[#allocation16_spill]] %s3300_s8  ;;  %s2445_s13 = sadd.s32 4294967294, %s3312_s11  }
  0x12   : > { %5374 = sst [smem:[#allocation17_spill]] %s3304_s9  ;;  %p57_p0 = scmp.ne.s32.totalorder %s3288_s28, %s3284_s27 }
  0x13   : > { %p3421_p1 = scmp.eq.s32.totalorder %s2444_s12, 0  ;;  %p208_p2 = scmp.ne.s32.totalorder %s3280_s26, %s3276_s25 }
  0x14   : > { %p209_p4 = scmp.eq.s32.totalorder %s2444_s12, 3  ;;  %p214_p5 = scmp.ne.s32.totalorder %s3276_s25, %s3272_s24 }
  0x15   : > { %p3430_p3 = por %p3421_p1, %p57_p0  ;;  %p215_p6 = scmp.eq.s32.totalorder %s2445_s13, 3 }
  0x16   : > { %p3436_p7 = por %p209_p4, %p208_p2  ;;  %p2446_p8 = scmp.ge.s32.totalorder %s3312_s11, 1 }
  0x17   : > { %p3441_p9 = por %p215_p6, %p214_p5  ;;  %p222_p10 = scmp.lt.s32.totalorder %s3312_s11, 5 }
  0x18   : > { %s5377_s17 = scalar_select %p3436_p7, 1, 0 }
  0x19   : > { %s5379_s18 = scalar_select %p3441_p9, 1, 0 }
  0x1a   : > { %5378 = sst [smem:[#allocation18_spill]] %s5377_s17  ;;  %p3446_p11 = pnand %p2446_p8, %p222_p10 }
  0x1b   : > { %5380 = sst [smem:[#allocation19_spill]] %s5379_s18  ;;  %s3314_s20 = smov [#allocation5]  }
  0x1c   : > { %s234_s21 = sshll.u32 %s3314_s20, 4  ;;  %p2746_p12 = pneg %p3446_p11  ;;  %s235_s21 = int_to_ptr.vmem [resolvable:$true] %s234_s21 }
  0x1d   : > { %s3315_s23 = smov [#allocation7]   ;;  %s3089_s12 = scalar_lea.vmem %s235_s21, 2048 }
  0x1e   : > { %p3454_p13 = pnand %p2746_p12, %p3421_p1  ;;  %s250_s27 = sshll.u32 %s3315_s23, 4  ;;  %s251_s27 = int_to_ptr.vmem [resolvable:$true] %s250_s27 }
  0x1f   : > { %p3090_p2 = scmp.ne.s32.totalorder %s235_s21, %s3089_s12  ;;  %p3097_p6 = scmp.lt.s32.totalorder %s235_s21, %s235_s21 }
  0x20   : > { %p3080_p0 = pneg %p3454_p13  ;;  %p3098_p8 = scmp.lt.s32.totalorder %s3089_s12, %s3089_s12 }
  0x22   : > { %p3092_p4 = pnand %p3090_p2, %p3080_p0  ;;  %p3099_p10 = por %p3098_p8, %p3097_p6 }
  0x24   : > { %p3093_p5 = pneg %p3092_p4 }
  0x26   : > { %p3100_p12 = pnand %p3099_p10, %p3093_p5 }
  0x28   : > { %3103 = shalt.err (!%p3100_p12)
}
  0x29   : > { %s5291_s13 = smov 128   ;;  %s5292_s20 = smov 8  }
  0x2a   : > { %s5383_s1 = sld [smem:[#allocation79_spill]]  ;;  %s3115_s18 = scalar_lea.vmem %s251_s27, 192 }
  0x2b   : > { %p3116_p2 = scmp.ne.s32.totalorder %s251_s27, %s3115_s18  ;;  %p3123_p5 = scmp.lt.s32.totalorder %s251_s27, %s251_s27 }
  0x2c   : > { %p3124_p8 = scmp.lt.s32.totalorder %s3115_s18, %s3115_s18 }
  0x2d   : > { %p3118_p4 = pnand %p3116_p2, %p3080_p0 }
  0x2e   : > { %p3125_p10 = por %p3124_p8, %p3123_p5 }
  0x2f   : > { %p3119_p6 = pneg %p3118_p4 }
  0x30   : > { %2749 = dma.hbm_to_vmem [thread:$0]  (!%p3454_p13), %s5383_s1, 2048, %s235_s21, [#allocation6], %s5291_s13, %s5291_s13, %s5292_s20  }
  0x31   : > { %p3126_p12 = pnand %p3125_p10, %p3119_p6 }
  0x33   : > { %3129 = shalt.err (!%p3126_p12)
}
  0x34   : > { %s3318_s12 = smov 64   ;;  %s3319_s24 = smov 4  }
  0x35   : > { %s5384_s3 = sld [smem:[#allocation80_spill]]  ;;  %s3320_s15 = smov [#allocation8]  }
  0x36   : > { %s266_s21 = sshll.u32 %s3320_s15, 4  ;;  %s267_s21 = int_to_ptr.vmem [resolvable:$true] %s266_s21 }
  0x37   : > { %s3141_s23 = scalar_lea.vmem %s267_s21, 2048  ;;  %p3149_p6 = scmp.lt.s32.totalorder %s267_s21, %s267_s21 }
  0x38   : > { %p3142_p2 = scmp.ne.s32.totalorder %s267_s21, %s3141_s23  ;;  %p3150_p8 = scmp.lt.s32.totalorder %s3141_s23, %s3141_s23 }
  0x3a   : > { %p3144_p4 = pnand %p3142_p2, %p3080_p0  ;;  %p3151_p10 = por %p3150_p8, %p3149_p6 }
  0x3b   : > { %2752 = dma.hbm_to_vmem [thread:$0]  (!%p3454_p13), %s5384_s3, 192, %s251_s27, [#allocation6], %s3318_s12, %s3318_s12, %s3319_s24  }
  0x3c   : > { %p3145_p5 = pneg %p3144_p4 }
  0x3e   : > { %p3152_p12 = pnand %p3151_p10, %p3145_p5 }
  0x40   : > { %3155 = shalt.err (!%p3152_p12)
}
  0x41   : > { %s5385_s5 = sld [smem:[#allocation81_spill]]  ;;  %s34_s17 = sadd.s32 1, %s3304_s9 }
  0x42   : > { %p35_p0 = scmp.ge.s32.totalorder %s34_s17, 2  ;;  %s37_s18 = sadd.s32 1, %s3308_s10 }
  0x43   : > { %s44_s22 = sadd.s32 1, %s3292_s29  ;;  %p51_p2 = scmp.ne.s32.totalorder %s3292_s29, %s3288_s28 }
  0x44   : > { %s5671_s17 = smov (%p35_p0, %s34_s17), 0  ;;  %s5673_s18 = smov (!%p35_p0, %s37_s18), %s3308_s10 }
  0x45   : > { %5386 = sst [smem:[#allocation20_spill]] %s5671_s17  ;;  %p52_p4 = scmp.eq.s32.totalorder %s3312_s11, 0 }
  0x46   : > { %s194_s27 = ssub.s32 %s3304_s9, %s5671_s17  ;;  %p39_p5 = scmp.ge.s32.totalorder %s5673_s18, 2 }
  0x47   : > { %2755 = dma.hbm_to_vmem [thread:$0]  (!%p3454_p13), %s5385_s5, 2048, %s267_s21, [#allocation9], %s5291_s13, %s5291_s13, %s5292_s20  }
  0x48   : > { %p2767_p6 = scmp.lt.s32.totalorder %s3312_s11, 4  ;;  %p3502_p13 = por %p52_p4, %p51_p2 }
  0x49   : > { %s283_s15 = sand.u32 1, %s3292_s29   ;;  %s5675_s18 = smov (%p39_p5, %s5673_s18), 0 }
  0x4a   : > { %5388 = sst [smem:[#allocation21_spill]] %s5675_s18  ;;  %s2727_s21 = smul.u32 432, %s283_s15 }
  0x4b   : > { %s41_s23 = ssub.s32 %s3308_s10, %s5675_s18  ;;  %s2728_s7 = smul.u32 6912, %s3308_s10 }
  0x4c   : > { %p42_p8 = scmp.eq.s32.totalorder %s41_s23, 0  ;;  %s195_s24 = sor.u32 %s194_s27, %s41_s23 }
  0x4d   : > { %p196_p10 = scmp.eq.s32.totalorder %s195_s24, 0  ;;  %s5389_s20 = sadd.s32 1, %s3280_s26 }
  0x4e   : > { %s3513_s13 = scalar_select %p42_p8, %s3292_s29, %s44_s22  }
  0x4f   : > { %s3518_s1 = scalar_select %p196_p10, %s3280_s26, %s5389_s20  }
  0x50   : > { %s293_s17 = scalar_lea.hbm %s5278_s0, %s2728_s7  ;;  %s287_s9 = scalar_lea.vmem [#allocation2], %s2727_s21 }
  0x51   : > { %s294_s8 = sshll.u32 %s287_s9, 4  ;;  %p3527_p12 = pnand %p2767_p6, %p3502_p13  ;;  %s295_s8 = int_to_ptr.vmem [resolvable:$true] %s294_s8 }
  0x52   : > { %s284_s27 = scalar_lea.sflag [#allocation3], %s283_s15  ;;  %s3169_s22 = scalar_lea.vmem %s295_s8, 6912 }
  0x53   : > { %p3158_p0 = pneg %p3527_p12  ;;  %p3170_p2 = scmp.ne.s32.totalorder %s295_s8, %s3169_s22 }
  0x54   : > { %s3321_s20 = smov [#allocation2]  }
  0x55   : > { %p3172_p4 = pnand %p3170_p2, %p3158_p0  ;;  %s3174_s3 = sshll.u32 %s3321_s20, 4  ;;  %s3175_s3 = int_to_ptr.vmem [resolvable:$false] %s3174_s3 }
  0x56   : > { %s3176_s5 = scalar_lea.vmem %s3175_s3, 13824  ;;  %p3177_p8 = scmp.lt.s32.totalorder %s295_s8, %s3175_s3 }
  0x57   : > { %p3173_p5 = pneg %p3172_p4  ;;  %p3178_p10 = scmp.lt.s32.totalorder %s3176_s5, %s3169_s22 }
  0x59   : > { %p3179_p9 = por %p3178_p10, %p3177_p8 }
  0x5b   : > { %p3180_p7 = pnand %p3179_p9, %p3173_p5 }
  0x5d   : > { %3183 = shalt.err (!%p3180_p7)
}
  0x5e   : > { %s5391_s9 = smov 8   ;;  %s5392_s12 = smov 128  }
  0x5f   : > { %2759 = dma.hbm_to_vmem [thread:$0]  (!%p3527_p12), %s293_s17, 6912, %s295_s8, %s284_s27, %s5392_s12, %s5392_s12, %s5391_s9  }
  0x60   : > { %306 = sbr.rel (%p3446_p11) target bundleno = 829 (0x33d), region = 48 }
  0x65   : > { %s308_s15 = sand.u32 1, %s3288_s28  }
  0x66   : > { %s2729_s21 = smul.u32 432, %s308_s15  ;;  %s309_s23 = scalar_lea.sflag [#allocation3], %s308_s15 }
  0x68   : > { %s312_s7 = scalar_lea.vmem [#allocation2], %s2729_s21 }
  0x69   : > { %3255 = dma.done.wait (%p3430_p3), %s309_s23, 6912  }
  0x6a   : > { %3257 = vsyncadd (%p3430_p3), %s309_s23, 4294960384 }
  0x6b   : > { %3259 = dma.done.wait (%p3421_p1), [#allocation6], 2240  }
  0x6c   : > { %3261 = vsyncadd (%p3421_p1), [#allocation6], 4294965056 }
  0x6d   : > { %3263 = dma.done.wait (%p3421_p1), [#allocation9], 2048  }
  0x6e   : > { %3265 = vsyncadd (%p3421_p1), [#allocation9], 4294965248  ;;  %s2458_s8 = smul.u32 192, %s3296_s30  ;;  %v404_v0 = vld [vmem:[#allocation5 + $0x78] sm:$0xff]  ;;  %v403_v1 = vld [vmem:[#allocation5 + $0x70] sm:$0xff]  ;;  %s2457_s17 = sshll.u32 %s3296_s30, 3 }
  0x6f   : > { %2594 = vmatprep.subr.mxu0 %v404_v0  ;;  %v402_v2 = vld [vmem:[#allocation5 + $0x68] sm:$0xff]  ;;  %v401_v3 = vld [vmem:[#allocation5 + $0x60] sm:$0xff]  ;;  %v400_v5 = vld [vmem:[#allocation5 + $0x58] sm:$0xff]  ;;  %vm1128_vm7 = vcmask 1046528   ;;  %vm1253_vm8 = vcmask 1045504   ;;  %s352_s20 = sand.u32 1, %s3276_s25  }
  0x70   : > { %2595 = vmatpush3.msra.mxu0 %v404_v0  ;;  %s3554_s16 = scalar_lea.vmem %s312_s7, %s2458_s8 [#allocation2]  ;;  %v399_v6 = vld [vmem:[#allocation5 + $0x50] sm:$0xff]  ;;  %v398_v7 = vld [vmem:[#allocation5 + $0x48] sm:$0xff]  ;;  %v397_v8 = vld [vmem:[#allocation5 + $0x40] sm:$0xff]  ;;  %s2456_s9 = sshll.u32 %s352_s20, 7 }
  0x71   : > { %2596 = vmatprep.subr.mxu0 %v403_v1  ;;  %v359_v4 = vld [vmem:[%s3554_s16] sm:$0xff]  ;;  %v396_v9 = vld [vmem:[#allocation5 + $0x38] sm:$0xff]  ;;  %v395_v10 = vld [vmem:[#allocation5 + $0x30] sm:$0xff]  ;;  %s5164_s12 = scalar_lea.vmem [#allocation10], %s2456_s9  ;;  %s5652_s15 = sld [smem:[#allocation16_spill]] }
  0x72   : > { %2597 = vmatpush3.msra.mxu0 %v403_v1  ;;  %2626 = vmatprep.mubr.f32.mxu0 %v359_v4  ;;  %v394_v11 = vld [vmem:[#allocation5 + $0x28] sm:$0xff]  ;;  %v393_v12 = vld [vmem:[#allocation5 + $0x20] sm:$0xff]  ;;  %v392_v13 = vld [vmem:[#allocation5 + $0x18] sm:$0xff]  ;;  %s2515_s21 = sshll.u32 %s3296_s30, 4  ;;  %s5653_s30 = sld [smem:[#allocation18_spill]] }
  0x73   : > { %2598 = vmatprep.subr.mxu0 %v402_v2  ;;  %v391_v14 = vld [vmem:[#allocation5 + $0x10] sm:$0xff]  ;;  %v390_v15 = vld [vmem:[#allocation5 + $0x8] sm:$0xff]  ;;  %v389_v16 = vld [vmem:[#allocation5] sm:$0xff]  ;;  %s5218_s24 = scalar_lea.sflag [#allocation4], %s352_s20  ;;  %s3322_s22 = smov [#allocation10]  }
  0x74   : > { %2599 = vmatpush3.msra.mxu0 %v402_v2  ;;  %v360_v17 = vld [vmem:[%s3554_s16 + $0x8] sm:$0xff]  ;;  %v361_v18 = vld [vmem:[%s3554_s16 + $0x10] sm:$0xff]  ;;  %v362_v19 = vld [vmem:[%s3554_s16 + $0x18] sm:$0xff]  ;;  %s3188_s3 = sshll.u32 %s3322_s22, 4  ;;  %s3189_s3 = int_to_ptr.vmem [resolvable:$false] %s3188_s3 }
  0x75   : > { %2600 = vmatprep.subr.mxu0 %v401_v3  ;;  %v363_v20 = vld [vmem:[%s3554_s16 + $0x20] sm:$0xff]  ;;  %v364_v21 = vld [vmem:[%s3554_s16 + $0x28] sm:$0xff]  ;;  %v365_v22 = vld [vmem:[%s3554_s16 + $0x30] sm:$0xff]  ;;  %s3190_s5 = scalar_lea.vmem %s3189_s3, 4096 }
  0x76   : > { %2601 = vmatpush3.msra.mxu0 %v401_v3  ;;  %v366_v23 = vld [vmem:[%s3554_s16 + $0x38] sm:$0xff]  ;;  %v367_v24 = vld [vmem:[%s3554_s16 + $0x40] sm:$0xff]  ;;  %v368_v25 = vld [vmem:[%s3554_s16 + $0x48] sm:$0xff] }
  0x77   : > { %2602 = vmatprep.subr.mxu0 %v400_v5  ;;  %v369_v26 = vld [vmem:[%s3554_s16 + $0x50] sm:$0xff]  ;;  %v370_v27 = vld [vmem:[%s3554_s16 + $0x58] sm:$0xff]  ;;  %v371_v28 = vld [vmem:[%s3554_s16 + $0x60] sm:$0xff]  ;;  %s2511_s23 = sshll.u32 %s5652_s15, 5 }
  0x78   : > { %2603 = vmatpush3.msra.mxu0 %v400_v5  ;;  %v372_v29 = vld [vmem:[%s3554_s16 + $0x68] sm:$0xff]  ;;  %v373_v30 = vld [vmem:[%s3554_s16 + $0x70] sm:$0xff]  ;;  %v374_v31 = vld [vmem:[%s3554_s16 + $0x78] sm:$0xff]  ;;  %v847_v5 = vlaneseq  ;;  %s2323_s7 = sadd.s32 %s2515_s21, %s2511_s23  ;;  %p5655_p3 = scmp.ne.s32.totalorder %s5653_s30, 0 }
  0x79   : > { %2604 = vmatprep.subr.mxu0 %v399_v6  ;;  %v375_v32 = vld [vmem:[%s3554_s16 + $0x80] sm:$0xff]  ;;  %v376_v33 = vld [vmem:[%s3554_s16 + $0x88] sm:$0xff]  ;;  %v377_v34 = vld [vmem:[%s3554_s16 + $0x90] sm:$0xff]  ;;  %s2512_s8 = sshll.u32 %s2323_s7, 7 }
  0x7a   : > { %2605 = vmatpush3.msra.mxu0 %v399_v6  ;;  %v378_v35 = vld [vmem:[%s3554_s16 + $0x98] sm:$0xff]  ;;  %v379_v36 = vld [vmem:[%s3554_s16 + $0xa0] sm:$0xff]  ;;  %v380_v37 = vld [vmem:[%s3554_s16 + $0xa8] sm:$0xff] }
  0x7b   : > { %2606 = vmatprep.subr.mxu0 %v398_v7  ;;  %v381_v38 = vld [vmem:[%s3554_s16 + $0xb0] sm:$0xff]  ;;  %v382_v39 = vld [vmem:[%s3554_s16 + $0xb8] sm:$0xff]  ;;  %v383_v40 = vld [vmem:[%s3554_s16 + $0xc0] sm:$0xff] }
  0x7c   : > { %2607 = vmatpush3.msra.mxu0 %v398_v7  ;;  %v384_v41 = vld [vmem:[%s3554_s16 + $0xc8] sm:$0xff]  ;;  %v385_v42 = vld [vmem:[%s3554_s16 + $0xd0] sm:$0xff]  ;;  %v386_v43 = vld [vmem:[%s3554_s16 + $0xd8] sm:$0xff] }
  0x7d   : > { %2608 = vmatprep.subr.mxu0 %v397_v8  ;;  %v387_v44 = vld [vmem:[%s3554_s16 + $0xe0] sm:$0xff]  ;;  %v388_v45 = vld [vmem:[%s3554_s16 + $0xe8] sm:$0xff]  ;;  %v2042_v60 = vld [vmem:[#allocation8 + $0x68] sm:$0xff] }
  0x7e   : > { %2609 = vmatpush3.msra.mxu0 %v397_v8  ;;  %v3589_v46 = vld [vmem:[%s5280_s2] ss:$0 sm:$0xff]  ;;  %v2044_v52 = vld [vmem:[#allocation8 + $0x78] sm:$0xff]  ;;  %v2041_v0 = vld [vmem:[#allocation8 + $0x60] sm:$0xff] }
  0x7f   : > { %2610 = vmatprep.subr.mxu0 %v396_v9  ;;  %2671 = vmatprep.subr.mxu1 %v2044_v52  ;;  %v2043_v56 = vld [vmem:[#allocation8 + $0x70] sm:$0xff]  ;;  %v2040_v4 = vld [vmem:[#allocation8 + $0x58] sm:$0xff] }
  0x80   : > { %2611 = vmatpush3.msra.mxu0 %v396_v9  ;;  %2672 = vmatpush3.msra.mxu1 %v2044_v52  ;;  %v2039_v9 = vld [vmem:[#allocation8 + $0x50] sm:$0xff] }
  0x81   : > { %2612 = vmatprep.subr.mxu0 %v395_v10  ;;  %2673 = vmatprep.subr.mxu1 %v2043_v56 }
  0x82   : > { %2613 = vmatpush3.msra.mxu0 %v395_v10  ;;  %2674 = vmatpush3.msra.mxu1 %v2043_v56 }
  0x83   : > { %2614 = vmatprep.subr.mxu0 %v394_v11  ;;  %2675 = vmatprep.subr.mxu1 %v2042_v60 }
  0x84   : > { %2615 = vmatpush3.msra.mxu0 %v394_v11  ;;  %2676 = vmatpush3.msra.mxu1 %v2042_v60 }
  0x85   : > { %2616 = vmatprep.subr.mxu0 %v393_v12  ;;  %2677 = vmatprep.subr.mxu1 %v2041_v0 }
  0x86   : > { %2617 = vmatpush3.msra.mxu0 %v393_v12  ;;  %2678 = vmatpush3.msra.mxu1 %v2041_v0  ;;  %v2032_v0 = vld [vmem:[#allocation8 + $0x18] sm:$0xff] }
  0x87   : > { %2618 = vmatprep.subr.mxu0 %v392_v13  ;;  %2679 = vmatprep.subr.mxu1 %v2040_v4 }
  0x88   : > { %2619 = vmatpush3.msra.mxu0 %v392_v13  ;;  %2680 = vmatpush3.msra.mxu1 %v2040_v4  ;;  %v2038_v13 = vld [vmem:[#allocation8 + $0x48] sm:$0xff] }
  0x89   : > { %2620 = vmatprep.subr.mxu0 %v391_v14  ;;  %2681 = vmatprep.subr.mxu1 %v2039_v9 }
  0x8a   : > { %2621 = vmatpush3.msra.mxu0 %v391_v14  ;;  %2682 = vmatpush3.msra.mxu1 %v2039_v9  ;;  %v3623_v14 = vshrl.u32 %v847_v5, 7 }
  0x8b   : > { %2622 = vmatprep.subr.mxu0 %v390_v15  ;;  %2683 = vmatprep.subr.mxu1 %v2038_v13 }
  0x8c   : > { %2623 = vmatpush3.msra.mxu0 %v390_v15  ;;  %2684 = vmatpush3.msra.mxu1 %v2038_v13  ;;  %vm881_vm2 = vcmp.gt.s32.totalorder %v3623_v14, 0  ;;  %v2031_v13 = vld [vmem:[#allocation8 + $0x10] sm:$0xff] }
  0x8d   : > { %2624 = vmatprep.subr.mxu0 %v389_v16 }
  0x8e   : > { %2625 = vmatpush3.msra.mxu0 %v389_v16 }
  0x8f   : > { %2627 = vmatmul.mubr.f32.vlgmr.msra.gmra.mxu0 %v360_v17 }
  0x90   : > { %2629 = vmatprep.mubr.f32.mxu0 %v361_v18  ;;  %v2037_v18 = vld [vmem:[#allocation8 + $0x40] sm:$0xff] }
  0x91   : > { %2685 = vmatprep.subr.mxu1 %v2037_v18 }
  0x92   : > { %2686 = vmatpush3.msra.mxu1 %v2037_v18 }
  0x93   : > { %2630 = vmatmul.mubr.f32.gmra.mxu0 %v362_v19 }
  0x94   : > { %2632 = vmatprep.mubr.f32.mxu0 %v363_v20  ;;  %v3629_v20 = vstv %s2457_s17  ;;  %s5654_s17 = sld [smem:[#allocation82_spill]] }
  0x95   : > { %vm851_vm0 = vcmp.gt.s32.totalorder %v3629_v20, 0  ;;  %vm861_vm1 = vcmp.lt.s32.totalorder %v3629_v20, 17 }
  0x96   : > { %vm3714_vm6 = vmand %vm851_vm0, %vm861_vm1 }
  0x97   : > { %2633 = vmatmul.mubr.f32.gmra.mxu0 %v364_v21  ;;  %vm3748_vm10 = vmand %vm3714_vm6, %vm881_vm2 }
  0x98   : > { %2635 = vmatprep.mubr.f32.mxu0 %v365_v22 }
  0x9a   : > { %s5210_s18 = scalar_lea.hbm %s5654_s17, %s2512_s8 }
  0x9b   : > { %2636 = vmatmul.mubr.f32.gmra.mxu0 %v366_v23 }
  0x9c   : > { %2638 = vmatprep.mubr.f32.mxu0 %v367_v24 }
  0x9f   : > { %2639 = vmatmul.mubr.f32.gmra.mxu0 %v368_v25  ;;  %v2036_v25 = vld [vmem:[#allocation8 + $0x38] sm:$0xff] }
  0xa0   : > { %2641 = vmatprep.mubr.f32.mxu0 %v369_v26  ;;  %2687 = vmatprep.subr.mxu1 %v2036_v25 }
  0xa1   : > { %2688 = vmatpush3.msra.mxu1 %v2036_v25  ;;  %v2030_v25 = vld [vmem:[#allocation8 + $0x8] sm:$0xff] }
  0xa3   : > { %2642 = vmatmul.mubr.f32.gmra.mxu0 %v370_v27  ;;  %v3636_v27 = vsub.s32 0, %v3623_v14 }
  0xa4   : > { %2644 = vmatprep.mubr.f32.mxu0 %v371_v28  ;;  %v3639_v28 = vsub.s32 1, %v3623_v14 }
  0xa7   : > { %2645 = vmatmul.mubr.f32.gmra.mxu0 %v372_v29 }
  0xa8   : > { %2647 = vmatprep.mubr.f32.mxu0 %v373_v30  ;;  %v1037_v30 = vld [vmem:[#allocation7] sm:$0x7] }
  0xab   : > { %2648 = vmatmul.mubr.f32.gmra.mxu0 %v374_v31 }
  0xac   : > { %2650 = vmatprep.mubr.f32.mxu0 %v375_v32 }
  0xaf   : > { %2651 = vmatmul.mubr.f32.gmra.mxu0 %v376_v33 }
  0xb0   : > { %2653 = vmatprep.mubr.f32.mxu0 %v377_v34  ;;  %v2035_v34 = vld [vmem:[#allocation8 + $0x30] sm:$0xff] }
  0xb1   : > { %2689 = vmatprep.subr.mxu1 %v2035_v34 }
  0xb2   : > { %2690 = vmatpush3.msra.mxu1 %v2035_v34 }
  0xb3   : > { %2654 = vmatmul.mubr.f32.gmra.mxu0 %v378_v35 }
  0xb4   : > { %2656 = vmatprep.mubr.f32.mxu0 %v379_v36  ;;  %v3647_v36 = vsub.s32 2, %v3623_v14 }
  0xb7   : > { %2657 = vmatmul.mubr.f32.gmra.mxu0 %v380_v37  ;;  %v3650_v37 = vadd.s32 1, %v3629_v20 }
  0xb8   : > { %2659 = vmatprep.mubr.f32.mxu0 %v381_v38 }
  0xb9   : > { %vm852_vm3 = vcmp.gt.s32.totalorder %v3650_v37, 0  ;;  %vm862_vm4 = vcmp.lt.s32.totalorder %v3650_v37, 17 }
  0xba   : > { %vm3736_vm9 = vmand %vm852_vm3, %vm862_vm4 }
  0xbb   : > { %2660 = vmatmul.mubr.f32.gmra.mxu0 %v382_v39  ;;  %vm3776_vm11 = vmand %vm3736_vm9, %vm881_vm2 }
  0xbc   : > { %2662 = vmatprep.mubr.f32.mxu0 %v383_v40 }
  0xbf   : > { %2663 = vmatmul.mubr.f32.gmra.mxu0 %v384_v41  ;;  %v2034_v41 = vld [vmem:[#allocation8 + $0x28] sm:$0xff] }
  0xc0   : > { %2665 = vmatprep.mubr.f32.mxu0 %v385_v42  ;;  %2691 = vmatprep.subr.mxu1 %v2034_v41 }
  0xc1   : > { %2692 = vmatpush3.msra.mxu1 %v2034_v41  ;;  %v3723_v41 = vadd.s32 4, %v3629_v20 }
  0xc3   : > { %2666 = vmatmul.mubr.f32.gmra.mxu0 %v386_v43  ;;  %v3657_v43 = vrot.slane %v1037_v30, %v3636_v27 }
  0xc4   : > { %2668 = vmatprep.mubr.f32.mxu0 %v387_v44  ;;  %v3660_v44 = vrot.slane %v1037_v30, %v3639_v28 }
  0xc7   : > { %2669 = vmatmul.mubr.f32.gmra.mxu0 %v388_v45 }
 0x14f   : > { %v2628_v47 = vpop.f32.mrf.mxu0 }
 0x150   : > { %v3592_v48 = vadd.f32 %v2628_v47, %v3589_v46 }
 0x151   : > { %v478_v49 = vpop.f32.mrf.mxu0 }
 0x152   : > { %v2461_v50 = vmul.f32 -1.442695, %v3592_v48  ;;  %v3596_v51 = vadd.f32 %v3589_v46, %v478_v49  ;;  %v1038_v49 = vld [vmem:[#allocation7 + $0x4] sm:$0x7] }
 0x153   : > { %v2631_v53 = vpop.f32.mrf.mxu0  ;;  %v3683_v4 = vrot.slane %v1038_v49, %v3639_v28 }
 0x154   : > { %2869 = vpow2.f32 %v2461_v50  ;;  %v2460_v54 = vmul.f32 -1.442695, %v3596_v51  ;;  %v3600_v55 = vadd.f32 %v2631_v53, %v3589_v46 }
 0x155   : > { %v488_v57 = vpop.f32.mrf.mxu0 }
 0x156   : > { %2871 = vpow2.f32 %v2460_v54  ;;  %v2463_v58 = vmul.f32 -1.442695, %v3600_v55  ;;  %v3604_v59 = vadd.f32 %v3589_v46, %v488_v57  ;;  %v2033_v54 = vld [vmem:[#allocation8 + $0x20] sm:$0xff]  ;;  %v3668_v57 = vrot.slane %v1037_v30, %v3647_v36 }
 0x157   : > { %v2634_v61 = vpop.f32.mrf.mxu0  ;;  %2693 = vmatprep.subr.mxu1 %v2033_v54 }
 0x158   : > { %2873 = vpow2.f32 %v2463_v58  ;;  %v2462_v62 = vmul.f32 -1.442695, %v3604_v59  ;;  %v3608_v63 = vadd.f32 %v2634_v61, %v3589_v46  ;;  %v3673_v58 = vadd.s32 16, %v3623_v14  ;;  %2694 = vmatpush3.msra.mxu1 %v2033_v54 }
 0x159   : > { %v498_v1 = vpop.f32.mrf.mxu0  ;;  %2695 = vmatprep.subr.mxu1 %v2032_v0 }
 0x15a   : > { %2875 = vpow2.f32 %v2462_v62  ;;  %v2465_v2 = vmul.f32 -1.442695, %v3608_v63  ;;  %v3612_v3 = vadd.f32 %v3589_v46, %v498_v1  ;;  %2696 = vmatpush3.msra.mxu1 %v2032_v0  ;;  %vm916_vm5 = vcmp.lt.s32.totalorder %v3673_v58, 17 }
 0x15b   : > { %v2637_v6 = vpop.f32.mrf.mxu0  ;;  %2697 = vmatprep.subr.mxu1 %v2031_v13  ;;  %v3758_v0 = vadd.s32 7, %v3629_v20  ;;  %vm3807_vm14 = vmand %vm3714_vm6, %vm916_vm5 }
 0x15c   : > { %2877 = vpow2.f32 %v2465_v2  ;;  %v2464_v7 = vmul.f32 -1.442695, %v3612_v3  ;;  %v3616_v8 = vadd.f32 %v2637_v6, %v3589_v46  ;;  %v3680_v2 = vrot.slane %v1038_v49, %v3636_v27  ;;  %2698 = vmatpush3.msra.mxu1 %v2031_v13  ;;  %vm922_vm1 = vmand %vm3736_vm9, %vm916_vm5 }
 0x15d   : > { %v508_v10 = vpop.f32.mrf.mxu0  ;;  %2699 = vmatprep.subr.mxu1 %v2030_v25  ;;  %5406 = vst [vmem:[#allocation29_spill] sm:$0xff] %v3758_v0 }
 0x15e   : > { %2879 = vpow2.f32 %v2464_v7  ;;  %v2467_v11 = vmul.f32 -1.442695, %v3616_v8  ;;  %v3621_v12 = vadd.f32 %v3589_v46, %v508_v10  ;;  %5393 = vst [vmem:[#allocation22_spill] sm:$0xff] %v3680_v2  ;;  %v3687_v7 = vrot.slane %v1038_v49, %v3647_v36  ;;  %v1039_v10 = vld [vmem:[#allocation7 + $0x8] sm:$0x7]  ;;  %2700 = vmatpush3.msra.mxu1 %v2030_v25 }
 0x15f   : > { %v2640_v15 = vpop.f32.mrf.mxu0  ;;  %v3705_v30 = vrot.slane %v1039_v10, %v3639_v28 }
 0x160   : > { %2881 = vpow2.f32 %v2467_v11  ;;  %v2466_v16 = vmul.f32 -1.442695, %v3621_v12  ;;  %v3627_v17 = vadd.f32 %v2640_v15, %v3589_v46 }
 0x161   : > { %v2870_v19 = vpop.eup %2869  ;;  %v518_v21 = vpop.f32.mrf.mxu0 }
 0x162   : > { %v718_v22 = vadd.f32 1.0, %v2870_v19  ;;  %2883 = vpow2.f32 %v2466_v16  ;;  %v2469_v23 = vmul.f32 -1.442695, %v3627_v17  ;;  %v3633_v24 = vadd.f32 %v3589_v46, %v518_v21 }
 0x163   : > { %v2872_v26 = vpop.eup %2871  ;;  %v2643_v29 = vpop.f32.mrf.mxu0  ;;  %v3694_v16 = vadd.s32 2, %v3629_v20 }
 0x164   : > { %2885 = vrcp.f32 %v718_v22  ;;  %v717_v31 = vadd.f32 1.0, %v2872_v26  ;;  %v2468_v32 = vmul.f32 -1.442695, %v3633_v24  ;;  %v3643_v33 = vadd.f32 %v2643_v29, %v3589_v46 }
 0x165   : > { %v2874_v35 = vpop.eup %2873  ;;  %2887 = vpow2.f32 %v2469_v23  ;;  %v528_v38 = vpop.f32.mrf.mxu0  ;;  %v3702_v29 = vadd.s32 3, %v3629_v20  ;;  %vm853_vm12 = vcmp.gt.s32.totalorder %v3694_v16, 0  ;;  %vm863_vm13 = vcmp.lt.s32.totalorder %v3694_v16, 17 }
 0x166   : > { %2889 = vrcp.f32 %v717_v31  ;;  %v720_v39 = vadd.f32 1.0, %v2874_v35  ;;  %v3654_v40 = vadd.f32 %v3589_v46, %v528_v38  ;;  %v2471_v45 = vmul.f32 -1.442695, %v3643_v33  ;;  %vm3867_vm3 = vmand %vm853_vm12, %vm863_vm13 }
 0x167   : > { %v2876_v42 = vpop.eup %2875  ;;  %2891 = vpow2.f32 %v2468_v32  ;;  %v2646_v47 = vpop.f32.mrf.mxu0  ;;  %v3708_v31 = vrot.slane %v1039_v10, %v3647_v36  ;;  %v2029_v36 = vld [vmem:[#allocation8] sm:$0xff]  ;;  %vm854_vm15 = vcmp.gt.s32.totalorder %v3702_v29, 0  ;;  %vm864_vm0 = vcmp.lt.s32.totalorder %v3702_v29, 17  ;;  %vm3893_vm4 = vmand %vm3867_vm3, %vm881_vm2 }
 0x168   : > { %2893 = vrcp.f32 %v720_v39  ;;  %v719_v50 = vadd.f32 1.0, %v2876_v42  ;;  %v2470_v52 = vmul.f32 -1.442695, %v3654_v40  ;;  %v3665_v53 = vadd.f32 %v2646_v47, %v3589_v46  ;;  %2701 = vmatprep.subr.mxu1 %v2029_v36 }
 0x169   : > { %v2878_v56 = vpop.eup %2877  ;;  %v538_v60 = vpop.f32.mrf.mxu0  ;;  %v3726_v42 = vadd.s32 5, %v3629_v20  ;;  %v3729_v47 = vrot.slane %v1039_v10, %v3636_v27  ;;  %2702 = vmatpush3.msra.mxu1 %v2029_v36  ;;  %vm865_vm12 = vcmp.lt.s32.totalorder %v3723_v41, 17 }
 0x16a   : > { %2895 = vrcp.f32 %v719_v50  ;;  %v722_v61 = vadd.f32 1.0, %v2878_v56  ;;  %v3677_v62 = vadd.f32 %v3589_v46, %v538_v60  ;;  %v2473_v5 = vmul.f32 -1.442695, %v3665_v53 }
 0x16b   : > { %v2880_v1 = vpop.eup %2879  ;;  %2897 = vpow2.f32 %v2471_v45  ;;  %v2649_v6 = vpop.f32.mrf.mxu0  ;;  %5399 = vst [vmem:[#allocation26_spill] sm:$0xff] %v3729_v47  ;;  %vm856_vm13 = vcmp.gt.s32.totalorder %v3726_v42, 0 }
 0x16c   : > { %v721_v9 = vadd.f32 1.0, %v2880_v1  ;;  %2899 = vpow2.f32 %v2470_v52  ;;  %v3690_v11 = vadd.f32 %v2649_v6, %v3589_v46  ;;  %v2472_v18 = vmul.f32 -1.442695, %v3677_v62 }
 0x16d   : > { %v2882_v15 = vpop.eup %2881  ;;  %2901 = vrcp.f32 %v722_v61  ;;  %v548_v19 = vpop.f32.mrf.mxu0  ;;  %v3755_v61 = vadd.s32 6, %v3629_v20 }
 0x16e   : > { %5394 = vst [vmem:[#allocation23_spill] sm:$0xff] %v3690_v11  ;;  %2903 = vrcp.f32 %v721_v9  ;;  %v724_v21 = vadd.f32 1.0, %v2882_v15  ;;  %v2475_v22 = vmul.f32 -1.442695, %v3690_v11  ;;  %v3699_v23 = vadd.f32 %v3589_v46, %v548_v19 }
 0x16f   : > { %v2884_v26 = vpop.eup %2883  ;;  %2905 = vpow2.f32 %v2473_v5  ;;  %v2652_v32 = vpop.f32.mrf.mxu0  ;;  %5405 = vst [vmem:[#allocation28_spill] sm:$0xff] %v3755_v61  ;;  %v3764_v9 = vadd.s32 8, %v3629_v20  ;;  %v3785_v19 = vadd.s32 9, %v3629_v20 }
 0x170   : > { %5395 = vst [vmem:[#allocation24_spill] sm:$0xff] %v3699_v23  ;;  %2907 = vrcp.f32 %v724_v21  ;;  %v723_v35 = vadd.f32 1.0, %v2884_v26  ;;  %v2474_v28 = vmul.f32 -1.442695, %v3699_v23  ;;  %v3720_v38 = vadd.f32 %v2652_v32, %v3589_v46 }
 0x171   : > { %v2886_v39 = vpop.eup %2885  ;;  %2909 = vpow2.f32 %v2472_v18  ;;  %v558_v45 = vpop.f32.mrf.mxu0  ;;  %5407 = vst [vmem:[#allocation30_spill] sm:$0xff] %v3764_v9  ;;  %5410 = vst [vmem:[#allocation31_spill] sm:$0xff] %v3785_v19 }
 0x172   : > { %5398 = vst [vmem:[#allocation25_spill] sm:$0xff] %v3720_v38  ;;  %v2888_v49 = vpop.eup %2887  ;;  %v808_v50 = vmul.f32 %v2886_v39, %v3592_v48  ;;  %2911 = vpow2.f32 %v2475_v22  ;;  %v2477_v54 = vmul.f32 -1.442695, %v3720_v38  ;;  %v3742_v56 = vadd.f32 %v3589_v46, %v558_v45 }
 0x173   : > { %v2890_v27 = vpop.eup %2889  ;;  %2913 = vrcp.f32 %v723_v35  ;;  %v726_v37 = vadd.f32 1.0, %v2888_v49  ;;  %v3752_v60 = vpop.f32.mrf.mxu0 }
 0x174   : > { %5402 = vst [vmem:[#allocation27_spill] sm:$0xff] %v3742_v56  ;;  %v2892_v1 = vpop.eup %2891  ;;  %v1008_v5 = vsel %vm3714_vm6, %v808_v50, 0.0  ;;  %v807_v6 = vmul.f32 %v2890_v27, %v3596_v51  ;;  %2915 = vpow2.f32 %v2474_v28  ;;  %v2476_v26 = vmul.f32 -1.442695, %v3742_v56  ;;  %vm3908_vm6 = vmand %vm854_vm15, %vm864_vm0 }
 0x175   : > { %v2894_v10 = vpop.eup %2893  ;;  %v3767_v13 = vmul.f32 %v3660_v44, %v1008_v5  ;;  %v3770_v15 = vmul.f32 %v3668_v57, %v1008_v5  ;;  %2917 = vpow2.f32 %v2477_v54  ;;  %v3782_v51 = vpop.f32.mrf.mxu0  ;;  %v725_v25 = vadd.f32 1.0, %v2892_v1  ;;  %vm928_vm15 = vmand %vm3908_vm6, %vm916_vm5 }
 0x176   : > { %v1007_v21 = vsel %vm3748_vm10, %v807_v6, 0.0  ;;  %v810_v22 = vmul.f32 %v2894_v10, %v3600_v55  ;;  %v3792_v35 = vmul.f32 %v3657_v43, %v1008_v5  ;;  %2919 = vrcp.f32 %v726_v37  ;;  %vm925_vm10 = vmand %vm3867_vm3, %vm916_vm5 }
 0x177   : > { %v2896_v32 = vpop.eup %2895  ;;  %v1130_v28 = vrot.slane %v3767_v13, 1  ;;  %v1080_v36 = vmul.f32 %v3660_v44, %v1007_v21  ;;  %v3796_v39 = vpop.f32.mrf.mxu0  ;;  %v1255_v45 = vrot.slane %v3770_v15, 2  ;;  %v1205_v49 = vmul.f32 %v3668_v57, %v1007_v21 }
 0x178   : > { %v2898_v20 = vpop.eup %2897  ;;  %v1010_v55 = vsel %vm3776_vm11, %v810_v22, 0.0  ;;  %v809_v50 = vmul.f32 %v2896_v32, %v3604_v59  ;;  %v1044_v48 = vmul.f32 %v3657_v43, %v1007_v21  ;;  %2921 = vrcp.f32 %v725_v25 }
 0x179   : > { %v2900_v27 = vpop.eup %2899  ;;  %v1129_v37 = vrot.slane %v1080_v36, 1  ;;  %v3813_v1 = vmul.f32 %v3660_v44, %v1010_v55  ;;  %v3817_v59 = vpop.f32.mrf.mxu0  ;;  %v1254_v34 = vrot.slane %v1205_v49, 2  ;;  %v3820_v6 = vmul.f32 %v3668_v57, %v1010_v55 }
 0x17a   : > { %v2902_v5 = vpop.eup %2901  ;;  %v3823_v10 = vmul.f32 %v3683_v4, %v1010_v55  ;;  %v3826_v13 = vmul.f32 %v3687_v7, %v1010_v55  ;;  %v1046_v21 = vmul.f32 %v3657_v43, %v1010_v55  ;;  %v1009_v22 = vsel %vm3807_vm14, %v809_v50, 0.0 }
 0x17b   : > { %v2904_v15 = vpop.eup %2903  ;;  %v1131_v18 = vsel %vm1128_vm7, %v1129_v37, %v1130_v28  ;;  %2923 = vpow2.f32 %v2476_v26  ;;  %v1256_v36 = vsel %vm1253_vm8, %v1254_v34, %v1255_v45  ;;  %v1134_v49 = vrot.slane %v3813_v1, 1  ;;  %v3847_v34 = vpop.f32.mrf.mxu0 }
 0x17c   : > { %5413 = vst [vmem:[#allocation32_spill] sm:$0xff] %v3823_v10  ;;  %5414 = vst [vmem:[#allocation33_spill] sm:$0xff] %v3826_v13  ;;  %v3832_v25 = vpop.eup %2905  ;;  %v1185_v32 = vadd.f32 %v1131_v18, %v1044_v48  ;;  %v3837_v19 = vmul.f32 %v3680_v2, %v1010_v55  ;;  %v1082_v54 = vmul.f32 %v3660_v44, %v1009_v22  ;;  %v1259_v18 = vrot.slane %v3820_v6, 2 }
 0x17d   : > { %v2908_v37 = vpop.eup %2907  ;;  %v1207_v26 = vmul.f32 %v3668_v57, %v1009_v22  ;;  %v812_v50 = vmul.f32 %v2902_v5, %v3608_v63  ;;  %v811_v48 = vmul.f32 %v2904_v15, %v3612_v3  ;;  %vm855_vm11 = vcmp.gt.s32.totalorder %v3723_v41, 0  ;;  %v5488_v41 = vld [vmem:[#allocation29_spill] sm:$0xff] }
 0x17e   : > { %5415 = vst [vmem:[#allocation34_spill] sm:$0xff] %v3837_v19  ;;  %v3849_v1 = vpop.eup %2909  ;;  %v3851_v55 = vadd.f32 %v1256_v36, %v1185_v32  ;;  %v1132_v61 = vrot.slane %v1082_v54, 1  ;;  %v814_v32 = vmul.f32 %v2908_v37, %v3616_v8  ;;  %v728_v36 = vadd.f32 1.0, %v2898_v20  ;;  %v3878_v8 = vpop.f32.mrf.mxu0  ;;  %vm4106_vm0 = vmand %vm855_vm11, %vm865_vm12 }
 0x17f   : > { %v3856_v0 = vpop.eup %2911  ;;  %v1257_v22 = vrot.slane %v1207_v26, 2  ;;  %v1012_v56 = vsel %vm922_vm1, %v812_v50, 0.0  ;;  %v1011_v63 = vsel %vm3736_vm9, %v811_v48, 0.0  ;;  %v727_v48 = vadd.f32 1.0, %v2900_v27  ;;  %vm3934_vm9 = vmand %vm3908_vm6, %vm881_vm2 }
 0x180   : > { %5416 = vst [vmem:[#allocation35_spill] sm:$0xff] %v3851_v55  ;;  %v2914_v3 = vpop.eup %2913  ;;  %v1085_v5 = vmul.f32 %v3660_v44, %v1012_v56  ;;  %v1210_v15 = vmul.f32 %v3668_v57, %v1012_v56  ;;  %v1133_v52 = vsel %vm1128_vm7, %v1130_v28, %v1132_v61  ;;  %v3875_v26 = vmul.f32 %v3683_v4, %v1012_v56 }
 0x181   : > { %v3871_v54 = vpop.eup %2915  ;;  %v1084_v50 = vmul.f32 %v3660_v44, %v1011_v63  ;;  %v1186_v16 = vadd.f32 %v1133_v52, %v3792_v35  ;;  %v1258_v47 = vsel %vm1253_vm8, %v1255_v45, %v1257_v22  ;;  %v3885_v20 = vmul.f32 %v3687_v7, %v1012_v56 }
 0x182   : > { %v3880_v37 = vpop.eup %2917  ;;  %v1047_v9 = vmul.f32 %v3657_v43, %v1011_v63  ;;  %v1137_v61 = vrot.slane %v1085_v5, 1  ;;  %v1262_v28 = vrot.slane %v1210_v15, 2  ;;  %v1209_v13 = vmul.f32 %v3668_v57, %v1011_v63 }
 0x183   : > { %v1135_v38 = vrot.slane %v1084_v50, 1  ;;  %v2920_v35 = vpop.eup %2919  ;;  %v1311_v45 = vadd.f32 %v1258_v47, %v1186_v16  ;;  %v1331_v56 = vmul.f32 %v3680_v2, %v1011_v63  ;;  %v3899_v22 = vmul.f32 %v3683_v4, %v1011_v63  ;;  %v3915_v2 = vpop.f32.mrf.mxu0 }
 0x184   : > { %v3902_v5 = vmul.f32 %v3687_v7, %v1011_v63  ;;  %v1260_v50 = vrot.slane %v1209_v13, 2  ;;  %v813_v16 = vmul.f32 %v2914_v3, %v3621_v12  ;;  %v816_v27 = vmul.f32 %v2920_v35, %v3627_v17 }
 0x185   : > { %v1136_v52 = vsel %vm1128_vm7, %v1134_v49, %v1135_v38  ;;  %v1138_v47 = vsel %vm1128_vm7, %v1135_v38, %v1137_v61  ;;  %v2922_v23 = vpop.eup %2921  ;;  %v3920_v55 = vadd.f32 %v1331_v56, %v1311_v45  ;;  %v3924_v49 = vsel %vm3867_vm3, %v814_v32, 0.0  ;;  %vm4138_vm3 = vmand %vm4106_vm0, %vm881_vm2 }
 0x186   : > { %v1187_v11 = vadd.f32 %v1136_v52, %v1046_v21  ;;  %v1188_v29 = vadd.f32 %v1138_v47, %v1047_v9  ;;  %v1261_v19 = vsel %vm1253_vm8, %v1259_v18, %v1260_v50  ;;  %v3928_v12 = vsel %vm3893_vm4, %v813_v16, 0.0 }
 0x187   : > { %v1263_v13 = vsel %vm1253_vm8, %v1260_v50, %v1262_v28  ;;  %v3951_v61 = vmul.f32 %v3660_v44, %v3928_v12  ;;  %v3957_v28 = vmul.f32 %v3668_v57, %v3928_v12  ;;  %v3961_v45 = vmul.f32 %v3660_v44, %v3924_v49 }
 0x188   : > { %v2924_v9 = vpop.eup %2923  ;;  %v3939_v21 = vadd.f32 %v1261_v19, %v1187_v11  ;;  %v3947_v32 = vadd.f32 %v1263_v13, %v1188_v29  ;;  %v815_v11 = vmul.f32 %v2922_v23, %v3633_v24  ;;  %v598_v19 = vpop.f32.mrf.mxu0  ;;  %v3965_v6 = vmul.f32 %v3668_v57, %v3924_v49 }
 0x189   : > { %5426 = vst [vmem:[#allocation37_spill] sm:$0xff] %v3951_v61  ;;  %5427 = vst [vmem:[#allocation38_spill] sm:$0xff] %v3957_v28  ;;  %2925 = vrcp.f32 %v728_v36  ;;  %v3969_v56 = vsel %vm3934_vm9, %v816_v27, 0.0  ;;  %v1049_v24 = vmul.f32 %v3657_v43, %v3924_v49  ;;  %v5312_v13 = vrot.slane %v3961_v45, 1 }
 0x18a   : > { %5425 = vst [vmem:[#allocation36_spill] sm:$0xff] %v3947_v32  ;;  %5428 = vst [vmem:[#allocation39_spill] sm:$0xff] %v3961_v45  ;;  %v1015_v17 = vsel %vm925_vm10, %v815_v11, 0.0  ;;  %2927 = vrcp.f32 %v727_v48  ;;  %v3975_v23 = vmul.f32 %v3660_v44, %v3969_v56  ;;  %v3979_v35 = vmul.f32 %v3668_v57, %v3969_v56  ;;  %v2667_v29 = vpop.f32.mrf.mxu0 }
 0x18b   : > { %5429 = vst [vmem:[#allocation40_spill] sm:$0xff] %v3965_v6  ;;  %v1088_v52 = vmul.f32 %v3660_v44, %v1015_v17  ;;  %v1213_v36 = vmul.f32 %v3668_v57, %v1015_v17  ;;  %v3985_v50 = vmul.f32 %v3683_v4, %v1015_v17  ;;  %v3988_v16 = vmul.f32 %v3687_v7, %v1015_v17 }
 0x18c   : > { %5430 = vst [vmem:[#allocation41_spill] sm:$0xff] %v3975_v23  ;;  %5431 = vst [vmem:[#allocation42_spill] sm:$0xff] %v3979_v35  ;;  %v3991_v48 = vmul.f32 %v3705_v30, %v1015_v17  ;;  %v730_v38 = vadd.f32 1.0, %v3832_v25  ;;  %v729_v28 = vadd.f32 1.0, %v3849_v1  ;;  %v732_v10 = vadd.f32 1.0, %v3856_v0 }
 0x18d   : > { %5432 = vst [vmem:[#allocation43_spill] sm:$0xff] %v3985_v50  ;;  %5433 = vst [vmem:[#allocation44_spill] sm:$0xff] %v3988_v16  ;;  %v1142_v27 = vrot.slane %v1088_v52, 1  ;;  %v1267_v63 = vrot.slane %v1213_v36, 2  ;;  %v731_v47 = vadd.f32 1.0, %v3871_v54  ;;  %v608_v36 = vpop.f32.mrf.mxu0  ;;  %v4013_v25 = vadd.f32 %v3752_v60, %v3589_v46 }
 0x18e   : > { %2929 = vrcp.f32 %v730_v38  ;;  %v4017_v1 = vadd.f32 %v3589_v46, %v3782_v51  ;;  %vm866_vm14 = vcmp.lt.s32.totalorder %v3726_v42, 17  ;;  %v733_v0 = vadd.f32 1.0, %v2924_v9 }
 0x18f   : > { %v1143_v18 = vsel %vm1128_vm7, %v5312_v13, %v1142_v27  ;;  %v734_v27 = vadd.f32 1.0, %v3880_v37  ;;  %2931 = vrcp.f32 %v729_v28  ;;  %v4023_v54 = vadd.f32 %v3796_v39, %v3589_v46  ;;  %vm4123_vm1 = vmand %vm856_vm13, %vm866_vm14 }
 0x190   : > { %v1190_v52 = vadd.f32 %v1143_v18, %v1049_v24  ;;  %v4027_v37 = vadd.f32 %v3589_v46, %v3817_v59  ;;  %v4030_v60 = vmul.f32 %v3708_v31, %v1015_v17  ;;  %2933 = vrcp.f32 %v732_v10  ;;  %v2670_v17 = vpop.f32.mrf.mxu0  ;;  %vm4154_vm4 = vmand %vm4123_vm1, %vm881_vm2 }
 0x191   : > { %v2479_v51 = vmul.f32 -1.442695, %v4013_v25  ;;  %v4035_v18 = vadd.f32 %v3847_v34, %v3589_v46  ;;  %v5434_v9 = vrot.slane %v3965_v6, 2  ;;  %2935 = vrcp.f32 %v731_v47  ;;  %vm934_vm9 = vmand %vm4123_vm1, %vm916_vm5 }
 0x192   : > { %v2478_v39 = vmul.f32 -1.442695, %v4017_v1  ;;  %v4043_v59 = vadd.f32 %v3589_v46, %v3878_v8  ;;  %2937 = vrcp.f32 %v734_v27  ;;  %v2481_v10 = vmul.f32 -1.442695, %v4023_v54  ;;  %v618_v13 = vpop.f32.mrf.mxu0 }
 0x193   : > { %v1268_v28 = vsel %vm1253_vm8, %v5434_v9, %v1267_v63  ;;  %v4048_v24 = vadd.f32 %v3915_v2, %v3589_v46  ;;  %v4051_v34 = vadd.f32 %v3589_v46, %v598_v19  ;;  %2939 = vrcp.f32 %v733_v0 }
 0x194   : > { %v4053_v63 = vadd.f32 %v1268_v28, %v1190_v52  ;;  %v2480_v8 = vmul.f32 -1.442695, %v4027_v37  ;;  %v4061_v47 = vadd.f32 %v2667_v29, %v3589_v46  ;;  %2941 = vpow2.f32 %v2479_v51 }
 0x195   : > { %v2483_v19 = vmul.f32 -1.442695, %v4035_v18  ;;  %v2482_v52 = vmul.f32 -1.442695, %v4043_v59  ;;  %2943 = vpow2.f32 %v2478_v39  ;;  %v2485_v28 = vmul.f32 -1.442695, %v4048_v24 }
 0x196   : > { %v2926_v38 = vpop.eup %2925  ;;  %5435 = vst [vmem:[#allocation45_spill] sm:$0xff] %v4053_v63  ;;  %v4069_v0 = vadd.f32 %v3589_v46, %v608_v36  ;;  %2945 = vpow2.f32 %v2481_v10  ;;  %v2484_v29 = vmul.f32 -1.442695, %v4051_v34  ;;  %vm858_vm12 = vcmp.gt.s32.totalorder %v5488_v41, 0 }
 0x197   : > { %v2928_v27 = vpop.eup %2927  ;;  %v818_v2 = vmul.f32 %v2926_v38, %v3643_v33  ;;  %v2487_v33 = vmul.f32 -1.442695, %v4061_v47  ;;  %2947 = vpow2.f32 %v2480_v8  ;;  %vm868_vm13 = vcmp.lt.s32.totalorder %v5488_v41, 17 }
 0x198   : > { %v817_v9 = vmul.f32 %v2928_v27, %v3654_v40  ;;  %5436 = vst [vmem:[#allocation46_spill] sm:$0xff] %v4069_v0  ;;  %v4093_v27 = vadd.f32 %v2670_v17, %v3589_v46  ;;  %v4111_v15 = vmul.f32 -1.442695, %v4069_v0  ;;  %2949 = vpow2.f32 %v2483_v19 }
 0x199   : > { %v1018_v61 = vsel %vm928_vm15, %v818_v2, 0.0  ;;  %v4096_v2 = vadd.f32 %v3589_v46, %v618_v13  ;;  %2951 = vpow2.f32 %v2482_v52  ;;  %v5459_v52 = vld [vmem:[#allocation23_spill] sm:$0xff]  ;;  %vm4360_vm15 = vmand %vm858_vm12, %vm868_vm13 }
 0x19a   : > { %v4074_v51 = vmul.f32 %v3660_v44, %v1018_v61  ;;  %v4077_v38 = vmul.f32 %v3668_v57, %v1018_v61  ;;  %v4080_v40 = vmul.f32 %v3683_v4, %v1018_v61  ;;  %v4083_v39 = vmul.f32 %v3687_v7, %v1018_v61  ;;  %5443 = vst [vmem:[#allocation53_spill] sm:$0xff] %v4093_v27 }
 0x19b   : > { %v4086_v36 = vmul.f32 %v3705_v30, %v1018_v61  ;;  %v4090_v10 = vsel %vm3908_vm6, %v817_v9, 0.0  ;;  %5444 = vst [vmem:[#allocation54_spill] sm:$0xff] %v4096_v2  ;;  %v4100_v11 = vmul.f32 %v3708_v31, %v1018_v61  ;;  %v2930_v17 = vpop.eup %2929  ;;  %2953 = vpow2.f32 %v2485_v28  ;;  %v5456_v28 = vld [vmem:[#allocation35_spill] sm:$0xff]  ;;  %vm931_vm6 = vmand %vm4106_vm0, %vm916_vm5 }
 0x19c   : > { %5437 = vst [vmem:[#allocation47_spill] sm:$0xff] %v4074_v51  ;;  %5438 = vst [vmem:[#allocation48_spill] sm:$0xff] %v4077_v38  ;;  %v4117_v61 = vmul.f32 %v3660_v44, %v4090_v10  ;;  %v4131_v46 = vmul.f32 %v3668_v57, %v4090_v10  ;;  %v2932_v3 = vpop.eup %2931  ;;  %v820_v13 = vmul.f32 %v2930_v17, %v3665_v53  ;;  %v4143_v19 = vmul.f32 -1.442695, %v4093_v27  ;;  %v5457_v38 = vld [vmem:[#allocation34_spill] sm:$0xff] }
 0x19d   : > { %5439 = vst [vmem:[#allocation49_spill] sm:$0xff] %v4080_v40  ;;  %5440 = vst [vmem:[#allocation50_spill] sm:$0xff] %v4083_v39  ;;  %v4146_v8 = vmul.f32 -1.442695, %v4096_v2  ;;  %v2934_v9 = vpop.eup %2933  ;;  %v819_v53 = vmul.f32 %v2932_v3, %v3677_v62  ;;  %2955 = vpow2.f32 %v2484_v29  ;;  %v1346_v51 = vadd.f32 %v5457_v38, %v5456_v28  ;;  %v5461_v3 = vld [vmem:[#allocation32_spill] sm:$0xff] }
 0x19e   : > { %5441 = vst [vmem:[#allocation51_spill] sm:$0xff] %v4086_v36  ;;  %5442 = vst [vmem:[#allocation52_spill] sm:$0xff] %v4090_v10  ;;  %v2936_v23 = vpop.eup %2935  ;;  %v4162_v39 = vsel %vm4106_vm0, %v820_v13, 0.0  ;;  %2957 = vpow2.f32 %v2487_v33  ;;  %v5460_v62 = vrot.slane %v3899_v22, 1  ;;  %v5462_v29 = vrot.slane %v5461_v3, 1 }
 0x19f   : > { %5445 = vst [vmem:[#allocation55_spill] sm:$0xff] %v4100_v11  ;;  %5448 = vst [vmem:[#allocation56_spill] sm:$0xff] %v4117_v61  ;;  %v822_v61 = vmul.f32 %v2934_v9, %v5459_v52  ;;  %v2938_v38 = vpop.eup %2937  ;;  %v4177_v13 = vsel %vm4138_vm3, %v819_v53, 0.0  ;;  %v5464_v9 = vld [vmem:[#allocation24_spill] sm:$0xff]  ;;  %v4182_v35 = vmul.f32 %v3660_v44, %v4162_v39  ;;  %v5471_v28 = vrot.slane %v3902_v5, 2 }
 0x1a0   : > { %5451 = vst [vmem:[#allocation57_spill] sm:$0xff] %v4131_v46  ;;  %5458 = vst [vmem:[#allocation35_spill] sm:$0xff] %v4162_v39  ;;  %v1416_v63 = vsel %vm1128_vm7, %v5462_v29, %v5460_v62  ;;  %v821_v52 = vmul.f32 %v2936_v23, %v5464_v9  ;;  %v2940_v33 = vpop.eup %2939  ;;  %v4186_v40 = vmul.f32 %v3660_v44, %v4177_v13  ;;  %v5472_v46 = vld [vmem:[#allocation33_spill] sm:$0xff] }
 0x1a1   : > { %5463 = vst [vmem:[#allocation34_spill] sm:$0xff] %v4177_v13  ;;  %5465 = vst [vmem:[#allocation23_spill] sm:$0xff] %v4182_v35  ;;  %v4190_v62 = vmul.f32 %v3668_v57, %v4177_v13  ;;  %v4194_v42 = vsel %vm4154_vm4, %v822_v61, 0.0  ;;  %v4198_v23 = vmul.f32 %v3668_v57, %v4162_v39  ;;  %v2942_v53 = vpop.eup %2941  ;;  %v4204_v9 = vadd.f32 %v1416_v63, %v1346_v51 }
 0x1a2   : > { %5466 = vst [vmem:[#allocation32_spill] sm:$0xff] %v4186_v40  ;;  %5468 = vst [vmem:[#allocation58_spill] sm:$0xff] %v4194_v42  ;;  %v4202_v3 = vmul.f32 %v3660_v44, %v4194_v42  ;;  %v1021_v29 = vsel %vm931_vm6, %v821_v52, 0.0  ;;  %v5473_v2 = vrot.slane %v5472_v46, 2  ;;  %v2944_v61 = vpop.eup %2943  ;;  %v4215_v27 = vmul.f32 %v3668_v57, %v4194_v42  ;;  %v5476_v40 = vld [vmem:[#allocation27_spill] sm:$0xff] }
 0x1a3   : > { %5467 = vst [vmem:[#allocation24_spill] sm:$0xff] %v4190_v62  ;;  %5469 = vst [vmem:[#allocation59_spill] sm:$0xff] %v4198_v23  ;;  %v1053_v13 = vmul.f32 %v3657_v43, %v4162_v39  ;;  %v1094_v0 = vmul.f32 %v3660_v44, %v1021_v29  ;;  %v1219_v63 = vmul.f32 %v3668_v57, %v1021_v29  ;;  %v2946_v51 = vpop.eup %2945 }
 0x1a4   : > { %5470 = vst [vmem:[#allocation60_spill] sm:$0xff] %v4202_v3  ;;  %v4211_v17 = vsel %vm1253_vm8, %v5473_v2, %v5471_v28  ;;  %5474 = vst [vmem:[#allocation33_spill] sm:$0xff] %v4215_v27  ;;  %v4225_v28 = vmul.f32 %v3683_v4, %v1021_v29  ;;  %v4234_v52 = vmul.f32 %v3687_v7, %v1021_v29  ;;  %v5475_v2 = vld [vmem:[#allocation25_spill] sm:$0xff]  ;;  %v2948_v42 = vpop.eup %2947  ;;  %v5478_v3 = vrot.slane %v4198_v23, 2 }
 0x1a5   : > { %v1152_v6 = vrot.slane %v1094_v0, 1  ;;  %v1277_v39 = vrot.slane %v1219_v63, 2  ;;  %v4237_v46 = vmul.f32 %v3705_v30, %v1021_v29  ;;  %v824_v62 = vmul.f32 %v2938_v38, %v5475_v2  ;;  %v2950_v32 = vpop.eup %2949 }
 0x1a6   : > { %v823_v45 = vmul.f32 %v2940_v33, %v5476_v40  ;;  %v5477_v63 = vrot.slane %v4182_v35, 1  ;;  %v736_v40 = vadd.f32 1.0, %v2942_v53  ;;  %v2952_v33 = vpop.eup %2951  ;;  %v738_v27 = vadd.f32 1.0, %v2946_v51 }
 0x1a7   : > { %v1278_v36 = vsel %vm1253_vm8, %v5478_v3, %v1277_v39  ;;  %v1024_v10 = vsel %vm934_vm9, %v824_v62, 0.0  ;;  %v4270_v62 = vmul.f32 %v3708_v31, %v1021_v29  ;;  %v740_v23 = vadd.f32 1.0, %v2950_v32  ;;  %vm4402_vm9 = vmand %vm4360_vm15, %vm881_vm2 }
 0x1a8   : > { %v1153_v11 = vsel %vm1128_vm7, %v5477_v63, %v1152_v6  ;;  %v4251_v38 = vsel %vm4123_vm1, %v823_v45, 0.0  ;;  %v4254_v2 = vmul.f32 %v3660_v44, %v1024_v10  ;;  %v4257_v6 = vmul.f32 %v3668_v57, %v1024_v10 }
 0x1a9   : > { %v1194_v50 = vadd.f32 %v1153_v11, %v1053_v13  ;;  %v4260_v63 = vmul.f32 %v3683_v4, %v1024_v10  ;;  %v4263_v39 = vmul.f32 %v3687_v7, %v1024_v10  ;;  %v2954_v11 = vpop.eup %2953  ;;  %v4274_v0 = vmul.f32 %v3705_v30, %v1024_v10 }
 0x1aa   : > { %5479 = vst [vmem:[#allocation25_spill] sm:$0xff] %v4254_v2  ;;  %5480 = vst [vmem:[#allocation27_spill] sm:$0xff] %v4257_v6  ;;  %v2956_v53 = vpop.eup %2955  ;;  %v4277_v16 = vmul.f32 %v3708_v31, %v1024_v10  ;;  %2959 = vrcp.f32 %v736_v40  ;;  %v4288_v3 = vmul.f32 %v3668_v57, %v4251_v38  ;;  %v735_v2 = vadd.f32 1.0, %v2944_v61  ;;  %v5489_v61 = vld [vmem:[#allocation26_spill] sm:$0xff] }
 0x1ab   : > { %5481 = vst [vmem:[#allocation61_spill] sm:$0xff] %v4260_v63  ;;  %5482 = vst [vmem:[#allocation62_spill] sm:$0xff] %v4263_v39  ;;  %v4265_v13 = vadd.f32 %v1278_v36, %v1194_v50  ;;  %v4281_v50 = vmul.f32 %v3660_v44, %v4251_v38  ;;  %v2958_v36 = vpop.eup %2957  ;;  %v737_v10 = vadd.f32 1.0, %v2948_v42  ;;  %v739_v35 = vadd.f32 1.0, %v2952_v33 }
 0x1ac   : > { %5484 = vst [vmem:[#allocation64_spill] sm:$0xff] %v4277_v16  ;;  %5486 = vst [vmem:[#allocation66_spill] sm:$0xff] %v4288_v3  ;;  %v742_v16 = vadd.f32 1.0, %v2954_v11  ;;  %v741_v45 = vadd.f32 1.0, %v2956_v53  ;;  %2961 = vrcp.f32 %v735_v2  ;;  %v744_v40 = vadd.f32 1.0, %v2958_v36 }
 0x1ad   : > { %5483 = vst [vmem:[#allocation63_spill] sm:$0xff] %v4265_v13  ;;  %5485 = vst [vmem:[#allocation65_spill] sm:$0xff] %v4281_v50  ;;  %v5487_v13 = vld [vmem:[#allocation28_spill] sm:$0xff]  ;;  %v1594_v29 = vadd.f32 %v4211_v17, %v4204_v9  ;;  %v1614_v42 = vmul.f32 %v5489_v61, %v3928_v12  ;;  %2963 = vrcp.f32 %v738_v27  ;;  %v1650_v51 = vmul.f32 %v3705_v30, %v3928_v12 }
 0x1ae   : > { %vm857_vm10 = vcmp.gt.s32.totalorder %v5487_v13, 0  ;;  %vm867_vm11 = vcmp.lt.s32.totalorder %v5487_v13, 17  ;;  %v1651_v32 = vmul.f32 %v3705_v30, %v3924_v49  ;;  %v1774_v33 = vmul.f32 %v3708_v31, %v3928_v12 }
 0x1af   : > { %2965 = vrcp.f32 %v737_v10  ;;  %v1630_v2 = vadd.f32 %v1614_v42, %v1594_v29  ;;  %v1775_v11 = vmul.f32 %v3708_v31, %v3924_v49  ;;  %v5490_v9 = vrot.slane %v3875_v26, 1  ;;  %vm4346_vm14 = vmand %vm857_vm10, %vm867_vm11 }
 0x1b0   : > { %v5491_v17 = vrot.slane %v3899_v22, 1  ;;  %2967 = vrcp.f32 %v740_v23  ;;  %v1698_v53 = vrot.slane %v1650_v51, 1  ;;  %v1699_v36 = vrot.slane %v1651_v32, 1  ;;  %vm4384_vm3 = vmand %vm4346_vm14, %vm881_vm2 }
 0x1b1   : > { %v1822_v6 = vrot.slane %v1774_v33, 2  ;;  %2969 = vrcp.f32 %v739_v35  ;;  %v1823_v39 = vrot.slane %v1775_v11, 2  ;;  %v5492_v10 = vrot.slane %v3885_v20, 2  ;;  %v4327_v20 = vld [vmem:[%s5282_s4] ss:$0 sm:$0xff]  ;;  %vm4421_vm10 = vmand %vm4346_vm14, %vm916_vm5 }
 0x1b2   : > { %v1418_v27 = vsel %vm1128_vm7, %v5491_v17, %v5490_v9  ;;  %v5493_v29 = vrot.slane %v3902_v5, 2  ;;  %2971 = vrcp.f32 %v742_v16  ;;  %v1700_v26 = vsel %vm1128_vm7, %v1698_v53, %v1699_v36  ;;  %v5495_v16 = vld [vmem:[#allocation22_spill] sm:$0xff]  ;;  %vm4465_vm11 = vmand %vm4360_vm15, %vm916_vm5 }
 0x1b3   : > { %v1471_v63 = vadd.f32 %v1418_v27, %v3920_v55  ;;  %v1615_v22 = vmul.f32 %v5489_v61, %v3924_v49  ;;  %v5494_v23 = vrot.slane %v3991_v48, 1  ;;  %2973 = vrcp.f32 %v741_v45 }
 0x1b4   : > { %v1542_v42 = vsel %vm1253_vm8, %v5493_v29, %v5492_v10  ;;  %v1754_v35 = vadd.f32 %v1700_v26, %v1630_v2  ;;  %v1824_v55 = vsel %vm1253_vm8, %v1822_v6, %v1823_v39  ;;  %2975 = vrcp.f32 %v744_v40 }
 0x1b5   : > { %v1702_v51 = vsel %vm1128_vm7, %v1699_v36, %v5494_v23  ;;  %v1595_v32 = vadd.f32 %v1542_v42, %v1471_v63  ;;  %v1825_v5 = vrot.slane %v4030_v60, 2  ;;  %v1332_v33 = vmul.f32 %v5495_v16, %v3928_v12  ;;  %v5504_v23 = vld [vmem:[#allocation31_spill] sm:$0xff] }
 0x1b6   : > { %v1369_v48 = vmul.f32 %v3683_v4, %v3928_v12  ;;  %2977 = vpow2.f32 %v4111_v15  ;;  %v1878_v45 = vadd.f32 %v1824_v55, %v1754_v35  ;;  %v4337_v6 = vmul.f32 %v3683_v4, %v3924_v49 }
 0x1b7   : > { %v1631_v2 = vadd.f32 %v1615_v22, %v1595_v32  ;;  %2979 = vpow2.f32 %v4143_v19  ;;  %v2960_v11 = vpop.eup %2959  ;;  %v1826_v27 = vsel %vm1253_vm8, %v1823_v39, %v1825_v5  ;;  %v1348_v53 = vadd.f32 %v1332_v33, %v3939_v21 }
 0x1b8   : > { %v1419_v60 = vrot.slane %v1369_v48, 1  ;;  %v4351_v9 = vadd.f32 %v4327_v20, %v1878_v45  ;;  %v826_v19 = vmul.f32 %v2960_v11, %v4013_v25  ;;  %v5350_v36 = vrot.slane %v4337_v6, 1  ;;  %v5500_v25 = vld [vmem:[#allocation30_spill] sm:$0xff] }
 0x1b9   : > { %v1755_v17 = vadd.f32 %v1702_v51, %v1631_v2  ;;  %v1493_v10 = vmul.f32 %v3687_v7, %v3928_v12  ;;  %v4369_v39 = vmul.f32 %v3687_v7, %v3924_v49  ;;  %vm859_vm0 = vcmp.gt.s32.totalorder %v5500_v25, 0  ;;  %v2962_v42 = vpop.eup %2961 }
 0x1ba   : > { %vm869_vm1 = vcmp.lt.s32.totalorder %v5500_v25, 17  ;;  %2981 = vpow2.f32 %v4146_v8  ;;  %v2491_v41 = vmul.f32 -1.442695, %v4351_v9  ;;  %v4378_v26 = vsel %vm4346_vm14, %v826_v19, 0.0  ;;  %v2964_v55 = vpop.eup %2963 }
 0x1bb   : > { %v1879_v29 = vadd.f32 %v1826_v27, %v1755_v17  ;;  %5501 = vst [vmem:[#allocation28_spill] sm:$0xff] %v4378_v26  ;;  %vm860_vm4 = vcmp.gt.s32.totalorder %v5504_v23, 0  ;;  %vm870_vm6 = vcmp.lt.s32.totalorder %v5504_v23, 17  ;;  %v1421_v8 = vsel %vm1128_vm7, %v1419_v60, %v5350_v36  ;;  %vm4522_vm12 = vmand %vm859_vm0, %vm869_vm1 }
 0x1bc   : > { %v1543_v51 = vrot.slane %v1493_v10, 2  ;;  %v4395_v35 = vmul.f32 %v5489_v61, %v3969_v56  ;;  %v825_v32 = vmul.f32 %v2962_v42, %v4017_v1  ;;  %v4408_v33 = vmul.f32 %v3660_v44, %v4378_v26  ;;  %v2966_v2 = vpop.eup %2965  ;;  %vm4537_vm13 = vmand %vm860_vm4, %vm870_vm6 }
 0x1bd   : > { %v4410_v48 = vadd.f32 %v1421_v8, %v1348_v53  ;;  %v4414_v45 = vmul.f32 %v3705_v30, %v3969_v56  ;;  %v828_v1 = vmul.f32 %v2964_v55, %v4023_v54  ;;  %v1057_v11 = vmul.f32 %v3657_v43, %v4378_v26  ;;  %v2968_v53 = vpop.eup %2967  ;;  %vm908_vm14 = vmand %vm4522_vm12, %vm881_vm2 }
 0x1be   : > { %5507 = vst [vmem:[#allocation29_spill] sm:$0xff] %v4408_v33  ;;  %v4429_v17 = vmul.f32 %v3668_v57, %v4378_v26  ;;  %v5349_v27 = vrot.slane %v4369_v39, 2  ;;  %v4434_v54 = vsel %vm4384_vm3, %v825_v32, 0.0  ;;  %v827_v15 = vmul.f32 %v2966_v2, %v4027_v37  ;;  %v2970_v10 = vpop.eup %2969  ;;  %vm946_vm0 = vmand %vm4537_vm13, %vm916_vm5 }
 0x1bf   : > { %2983 = vpow2.f32 %v2491_v41  ;;  %v4438_v19 = vadd.f32 %v4327_v20, %v1879_v29  ;;  %v4442_v42 = vmul.f32 %v3660_v44, %v4434_v54  ;;  %v4446_v8 = vsel %vm4402_vm9, %v828_v1, 0.0  ;;  %v2972_v37 = vpop.eup %2971 }
 0x1c0   : > { %5510 = vst [vmem:[#allocation26_spill] sm:$0xff] %v4429_v17  ;;  %v830_v55 = vmul.f32 %v2968_v53, %v4035_v18  ;;  %v4452_v22 = vsel %vm1253_vm8, %v1543_v51, %v5349_v27  ;;  %v4456_v41 = vmul.f32 %v3668_v57, %v4434_v54  ;;  %v1027_v29 = vsel %vm4421_vm10, %v827_v15, 0.0  ;;  %v2974_v5 = vpop.eup %2973 }
 0x1c1   : > { %5511 = vst [vmem:[#allocation22_spill] sm:$0xff] %v4442_v42  ;;  %v829_v51 = vmul.f32 %v2970_v10, %v4043_v59  ;;  %v1100_v2 = vmul.f32 %v3660_v44, %v1027_v29  ;;  %v1225_v1 = vmul.f32 %v3668_v57, %v1027_v29  ;;  %v4475_v53 = vmul.f32 %v3657_v43, %v4446_v8  ;;  %v2976_v15 = vpop.eup %2975 }
 0x1c2   : > { %5512 = vst [vmem:[#allocation30_spill] sm:$0xff] %v4456_v41  ;;  %v4479_v40 = vmul.f32 %v3683_v4, %v1027_v29  ;;  %v4482_v63 = vmul.f32 %v3687_v7, %v1027_v29  ;;  %v4486_v59 = vmul.f32 %v3660_v44, %v4446_v8  ;;  %v4491_v60 = vmul.f32 %v3705_v30, %v1027_v29 }
 0x1c3   : > { %v4488_v10 = vpop.eup %2977  ;;  %v1162_v27 = vrot.slane %v1100_v2, 1  ;;  %v1287_v36 = vrot.slane %v1225_v1, 2  ;;  %v1030_v21 = vsel %vm4465_vm11, %v830_v55, 0.0  ;;  %v4499_v3 = vmul.f32 %v3708_v31, %v1027_v29 }
 0x1c4   : > { %5515 = vst [vmem:[#allocation31_spill] sm:$0xff] %v4479_v40  ;;  %5516 = vst [vmem:[#allocation67_spill] sm:$0xff] %v4482_v63  ;;  %v4495_v32 = vpop.eup %2979  ;;  %v4502_v50 = vmul.f32 %v3660_v44, %v1030_v21  ;;  %v4506_v2 = vsel %vm4360_vm15, %v829_v51, 0.0  ;;  %v5518_v1 = vrot.slane %v4408_v33, 1  ;;  %v4513_v18 = vmul.f32 %v3668_v57, %v1030_v21 }
 0x1c5   : > { %5517 = vst [vmem:[#allocation68_spill] sm:$0xff] %v4499_v3  ;;  %v4516_v42 = vmul.f32 %v3683_v4, %v1030_v21  ;;  %v5525_v41 = vrot.slane %v4429_v17, 2  ;;  %v832_v33 = vmul.f32 %v2972_v37, %v4048_v24  ;;  %v4550_v23 = vmul.f32 %v3708_v31, %v1030_v21  ;;  %vm911_vm15 = vmand %vm4537_vm13, %vm881_vm2 }
 0x1c6   : > { %v1163_v26 = vsel %vm1128_vm7, %v5518_v1, %v1162_v27  ;;  %v4528_v27 = vmul.f32 %v3687_v7, %v1030_v21  ;;  %v4531_v1 = vmul.f32 %v3705_v30, %v1030_v21  ;;  %v1167_v51 = vrot.slane %v4502_v50, 1  ;;  %vm4702_vm2 = vmand %vm4522_vm12, %vm916_vm5 }
 0x1c7   : > { %5519 = vst [vmem:[#allocation69_spill] sm:$0xff] %v4516_v42  ;;  %v1198_v29 = vadd.f32 %v1163_v26, %v1057_v11  ;;  %v2982_v25 = vpop.eup %2981  ;;  %v1288_v26 = vsel %vm1253_vm8, %v5525_v41, %v1287_v36  ;;  %v1292_v63 = vrot.slane %v4513_v18, 2  ;;  %5526 = vst [vmem:[#allocation71_spill] sm:$0xff] %v4550_v23  ;;  %v831_v3 = vmul.f32 %v2974_v5, %v4051_v34 }
 0x1c8   : > { %5522 = vst [vmem:[#allocation70_spill] sm:$0xff] %v4528_v27  ;;  %v1032_v24 = vsel %vm4522_vm12, %v832_v33, 0.0  ;;  %v834_v37 = vmul.f32 %v2976_v15, %v4061_v47  ;;  %v1102_v5 = vmul.f32 %v3660_v44, %v4506_v2  ;;  %v1164_v15 = vrot.slane %v4486_v59, 1 }
 0x1c9   : > { %v4557_v36 = vadd.f32 %v1288_v26, %v1198_v29  ;;  %v4569_v21 = vmul.f32 %v3683_v4, %v1032_v24  ;;  %v4572_v41 = vmul.f32 %v3687_v7, %v1032_v24  ;;  %v4577_v33 = vmul.f32 %v5495_v16, %v1032_v24 }
 0x1ca   : > { %v4580_v14 = vmul.f32 %v3705_v30, %v1032_v24  ;;  %v1031_v47 = vsel %vm908_vm14, %v831_v3, 0.0  ;;  %v4584_v29 = vmul.f32 %v5489_v61, %v1032_v24  ;;  %v4587_v26 = vmul.f32 %v3708_v31, %v1032_v24 }
 0x1cb   : > { %5527 = vst [vmem:[#allocation72_spill] sm:$0xff] %v4557_v36  ;;  %v1387_v50 = vmul.f32 %v3683_v4, %v1031_v47  ;;  %v1034_v40 = vsel %vm911_vm15, %v834_v37, 0.0  ;;  %v1511_v11 = vmul.f32 %v3687_v7, %v1031_v47  ;;  %v4594_v27 = vmul.f32 %v3705_v30, %v1031_v47 }
 0x1cc   : > { %v2984_v18 = vpop.eup %2983  ;;  %5528 = vst [vmem:[#allocation73_spill] sm:$0xff] %v4580_v14  ;;  %5529 = vst [vmem:[#allocation74_spill] sm:$0xff] %v4584_v29  ;;  %v1344_v3 = vmul.f32 %v5495_v16, %v1031_v47  ;;  %v1165_v36 = vrot.slane %v1102_v5, 1  ;;  %v1226_v24 = vmul.f32 %v3668_v57, %v4446_v8  ;;  %v4601_v37 = vmul.f32 %v5489_v61, %v1031_v47 }
 0x1cd   : > { %5530 = vst [vmem:[#allocation75_spill] sm:$0xff] %v4587_v26  ;;  %5531 = vst [vmem:[#allocation76_spill] sm:$0xff] %v4594_v27  ;;  %v1449_v59 = vrot.slane %v1387_v50, 1  ;;  %v4604_v44 = vmul.f32 %v3708_v31, %v1031_v47  ;;  %v1227_v34 = vmul.f32 %v3668_v57, %v4506_v2  ;;  %v1573_v42 = vrot.slane %v1511_v11, 2 }
 0x1ce   : > { %5532 = vst [vmem:[#allocation77_spill] sm:$0xff] %v4601_v37  ;;  %v1166_v50 = vsel %vm1128_vm7, %v1164_v15, %v1165_v36  ;;  %v1628_v5 = vmul.f32 %v5489_v61, %v1034_v40  ;;  %v1289_v17 = vrot.slane %v1226_v24, 2  ;;  %v5534_v14 = vrot.slane %v4569_v21, 1 }
 0x1cf   : > { %5533 = vst [vmem:[#allocation78_spill] sm:$0xff] %v4604_v44  ;;  %v1199_v23 = vadd.f32 %v1166_v50, %v4475_v53  ;;  %v1290_v29 = vrot.slane %v1227_v34, 2  ;;  %v4616_v47 = vmul.f32 %v3705_v30, %v1034_v40  ;;  %v743_v57 = vadd.f32 1.0, %v4488_v10 }
 0x1d0   : > { %v1451_v37 = vsel %vm1128_vm7, %v1449_v59, %v5534_v14  ;;  %v746_v11 = vadd.f32 1.0, %v4495_v32  ;;  %v745_v26 = vadd.f32 1.0, %v2982_v25  ;;  %v4622_v27 = vmul.f32 %v3708_v31, %v1034_v40  ;;  %v5535_v40 = vld [vmem:[#allocation52_spill] sm:$0xff] }
 0x1d1   : > { %v1291_v15 = vsel %vm1253_vm8, %v1289_v17, %v1290_v29  ;;  %v1059_v53 = vmul.f32 %v3657_v43, %v4506_v2  ;;  %v1168_v34 = vsel %vm1128_vm7, %v1165_v36, %v1167_v51  ;;  %2985 = vrcp.f32 %v743_v57 }
 0x1d2   : > { %v1324_v24 = vadd.f32 %v1291_v15, %v1199_v23  ;;  %v1293_v14 = vsel %vm1253_vm8, %v1290_v29, %v1292_v63  ;;  %v1965_v59 = vadd.f32 1.0, %v2984_v18  ;;  %2987 = vrcp.f32 %v746_v11  ;;  %v5537_v11 = vld [vmem:[#allocation43_spill] sm:$0xff] }
 0x1d3   : > { %v1200_v10 = vadd.f32 %v1168_v34, %v1059_v53  ;;  %v2492_v32 = vmul.f32 -1.442695, %v4438_v19  ;;  %v1596_v17 = vadd.f32 %v4452_v22, %v4410_v48  ;;  %2989 = vrcp.f32 %v745_v26 }
 0x1d4   : > { %v1360_v25 = vadd.f32 %v1344_v3, %v1324_v24  ;;  %v1654_v50 = vmul.f32 %v3705_v30, %v5535_v40  ;;  %v1703_v44 = vrot.slane %v4414_v45, 1  ;;  %2991 = vrcp.f32 %v1965_v59  ;;  %v5540_v59 = vld [vmem:[#allocation36_spill] sm:$0xff] }
 0x1d5   : > { %v1325_v51 = vadd.f32 %v1293_v14, %v1200_v10  ;;  %v1632_v23 = vadd.f32 %v4395_v35, %v1596_v17  ;;  %v1777_v63 = vmul.f32 %v3708_v31, %v3969_v56  ;;  %2993 = vpow2.f32 %v2492_v32 }
 0x1d6   : > { %v1484_v36 = vadd.f32 %v1451_v37, %v1360_v25  ;;  %v1704_v18 = vrot.slane %v1654_v50, 1  ;;  %v1778_v48 = vmul.f32 %v3708_v31, %v5535_v40  ;;  %v5536_v22 = vrot.slane %v4572_v41, 2 }
 0x1d7   : > { %v1733_v26 = vrot.slane %v4616_v47, 1  ;;  %v1333_v35 = vmul.f32 %v5495_v16, %v3924_v49  ;;  %v1827_v57 = vrot.slane %v1777_v63, 2  ;;  %v5538_v15 = vrot.slane %v5537_v11, 1  ;;  %v5541_v49 = vld [vmem:[#allocation44_spill] sm:$0xff] }
 0x1d8   : > { %v1575_v29 = vsel %vm1253_vm8, %v1573_v42, %v5536_v22  ;;  %v1705_v3 = vsel %vm1128_vm7, %v1703_v44, %v1704_v18  ;;  %v1828_v37 = vrot.slane %v1778_v48, 2  ;;  %v5539_v53 = vrot.slane %v4337_v6, 1  ;;  %v5546_v48 = vld [vmem:[#allocation39_spill] sm:$0xff] }
 0x1d9   : > { %v1608_v24 = vadd.f32 %v1575_v29, %v1484_v36  ;;  %v4653_v42 = vadd.f32 %v4577_v33, %v1325_v51  ;;  %v1756_v14 = vadd.f32 %v1705_v3, %v1632_v23  ;;  %v1349_v10 = vadd.f32 %v1333_v35, %v5540_v59  ;;  %v5544_v51 = vld [vmem:[#allocation51_spill] sm:$0xff]  ;;  %v5548_v29 = vld [vmem:[#allocation37_spill] sm:$0xff]  ;;  %v5553_v59 = vld [vmem:[#allocation38_spill] sm:$0xff] }
 0x1da   : > { %v1423_v34 = vsel %vm1128_vm7, %v5539_v53, %v5538_v15  ;;  %v1829_v32 = vsel %vm1253_vm8, %v1827_v57, %v1828_v37  ;;  %v5542_v17 = vrot.slane %v5541_v49, 2  ;;  %v5543_v44 = vrot.slane %v4369_v39, 2  ;;  %v5550_v3 = vld [vmem:[#allocation55_spill] sm:$0xff]  ;;  %v5551_v15 = vld [vmem:[#allocation40_spill] sm:$0xff] }
 0x1db   : > { %v1617_v6 = vmul.f32 %v5489_v61, %v5535_v40  ;;  %v1048_v50 = vmul.f32 %v3657_v43, %v3928_v12  ;;  %v1880_v63 = vadd.f32 %v1829_v32, %v1756_v14  ;;  %v1473_v33 = vadd.f32 %v1423_v34, %v1349_v10 }
 0x1dc   : > { %v1547_v25 = vsel %vm1253_vm8, %v5543_v44, %v5542_v17  ;;  %v5545_v23 = vrot.slane %v5544_v51, 1  ;;  %v5547_v22 = vrot.slane %v5546_v48, 1  ;;  %v5549_v35 = vrot.slane %v5548_v29, 1  ;;  %v5557_v48 = vld [vmem:[#allocation46_spill] sm:$0xff] }
 0x1dd   : > { %v1830_v57 = vrot.slane %v5550_v3, 2  ;;  %v5552_v53 = vrot.slane %v5551_v15, 2  ;;  %v5554_v49 = vrot.slane %v5553_v59, 2  ;;  %v1372_v34 = vmul.f32 %v3683_v4, %v3969_v56 }
 0x1de   : > { %v1707_v36 = vsel %vm1128_vm7, %v1704_v18, %v5545_v23  ;;  %v1141_v39 = vsel %vm1128_vm7, %v5549_v35, %v5547_v22  ;;  %v4683_v18 = vadd.f32 %v4327_v20, %v1880_v63  ;;  %v1597_v14 = vadd.f32 %v1547_v25, %v1473_v33  ;;  %v2986_v23 = vpop.eup %2985 }
 0x1df   : > { %v1189_v11 = vadd.f32 %v1141_v39, %v1048_v50  ;;  %v1266_v12 = vsel %vm1253_vm8, %v5554_v49, %v5552_v53  ;;  %v4687_v10 = vmul.f32 %v3683_v4, %v5535_v40  ;;  %v1496_v32 = vmul.f32 %v3687_v7, %v3969_v56  ;;  %v2988_v33 = vpop.eup %2987  ;;  %v5558_v39 = vld [vmem:[#allocation34_spill] sm:$0xff] }
 0x1e0   : > { %v4691_v17 = vadd.f32 %v1628_v5, %v1608_v24  ;;  %v1831_v44 = vsel %vm1253_vm8, %v1828_v37, %v1830_v57  ;;  %v4696_v51 = vmul.f32 %v3687_v7, %v5535_v40  ;;  %v2493_v63 = vmul.f32 -1.442695, %v4683_v18  ;;  %v2990_v3 = vpop.eup %2989  ;;  %v5559_v57 = vld [vmem:[#allocation53_spill] sm:$0xff]  ;;  %v5560_v49 = vld [vmem:[#allocation54_spill] sm:$0xff] }
 0x1e1   : > { %v1314_v50 = vadd.f32 %v1266_v12, %v1189_v11  ;;  %v1334_v5 = vmul.f32 %v5495_v16, %v3969_v56  ;;  %v1424_v37 = vrot.slane %v1372_v34, 1  ;;  %v1425_v24 = vrot.slane %v4687_v10, 1  ;;  %v2992_v59 = vpop.eup %2991 }
 0x1e2   : > { %v833_v22 = vmul.f32 %v2986_v23, %v5557_v48  ;;  %v1633_v29 = vadd.f32 %v1617_v6, %v1597_v14  ;;  %v1548_v35 = vrot.slane %v1496_v32, 2  ;;  %v1618_v13 = vmul.f32 %v5489_v61, %v5558_v39  ;;  %v2994_v10 = vpop.eup %2993 }
 0x1e3   : > { %v836_v11 = vmul.f32 %v2988_v33, %v5559_v57  ;;  %2995 = vpow2.f32 %v2493_v63  ;;  %v1350_v15 = vadd.f32 %v1334_v5, %v1314_v50  ;;  %v1549_v53 = vrot.slane %v4696_v51, 2 }
 0x1e4   : > { %v1033_v6 = vsel %vm4702_vm2, %v833_v22, 0.0  ;;  %v835_v12 = vmul.f32 %v2990_v3, %v5560_v49  ;;  %v1426_v34 = vsel %vm1128_vm7, %v1424_v37, %v1425_v24  ;;  %v1656_v14 = vmul.f32 %v3705_v30, %v5558_v39  ;;  %v5567_v3 = vld [vmem:[#allocation50_spill] sm:$0xff] }
 0x1e5   : > { %v1389_v58 = vmul.f32 %v3683_v4, %v1033_v6  ;;  %v1513_v32 = vmul.f32 %v3687_v7, %v1033_v6  ;;  %v4728_v50 = vmul.f32 %v3705_v30, %v1033_v6  ;;  %v4731_v51 = vmul.f32 %v3708_v31, %v1033_v6 }
 0x1e6   : > { %v1036_v23 = vsel %vm946_vm0, %v836_v11, 0.0  ;;  %v1035_v25 = vsel %vm4537_vm13, %v835_v12, 0.0  ;;  %v2013_v63 = vmul.f32 %v2992_v59, %v4351_v9  ;;  %v1966_v5 = vadd.f32 1.0, %v2994_v10  ;;  %v5566_v59 = vld [vmem:[#allocation45_spill] sm:$0xff] }
 0x1e7   : > { %v1452_v37 = vrot.slane %v1389_v58, 1  ;;  %v1576_v33 = vrot.slane %v1513_v32, 2  ;;  %v1757_v48 = vadd.f32 %v1707_v36, %v1633_v29  ;;  %v1474_v22 = vadd.f32 %v1426_v34, %v1350_v15  ;;  %v5563_v58 = vld [vmem:[#allocation35_spill] sm:$0xff] }
 0x1e8   : > { %v4738_v57 = vmul.f32 %v3705_v30, %v1036_v23  ;;  %v4741_v49 = vmul.f32 %v3708_v31, %v1036_v23  ;;  %2703 = vmatprep.mubr.f32.mxu1 %v2013_v63  ;;  %v1550_v11 = vsel %vm1253_vm8, %v1548_v35, %v1549_v53  ;;  %v5561_v55 = vrot.slane %v4569_v21, 1 }
 0x1e9   : > { %v4749_v36 = vmul.f32 %v5489_v61, %v1035_v25  ;;  %2997 = vrcp.f32 %v1966_v5  ;;  %v5562_v15 = vrot.slane %v4572_v41, 2  ;;  %v4756_v12 = vmul.f32 %v3705_v30, %v1035_v25 }
 0x1ea   : > { %v1453_v9 = vsel %vm1128_vm7, %v5561_v55, %v1452_v37  ;;  %v4759_v35 = vmul.f32 %v3708_v31, %v1035_v25  ;;  %v1881_v34 = vadd.f32 %v1831_v44, %v1757_v48  ;;  %v1598_v10 = vadd.f32 %v1550_v11, %v1474_v22  ;;  %v5564_v11 = vld [vmem:[#allocation49_spill] sm:$0xff] }
 0x1eb   : > { %v1485_v29 = vadd.f32 %v1453_v9, %v4653_v42  ;;  %v1577_v6 = vsel %vm1253_vm8, %v5562_v15, %v1576_v33  ;;  %v1657_v32 = vmul.f32 %v3705_v30, %v5563_v58  ;;  %v1708_v42 = vrot.slane %v1656_v14, 1 }
 0x1ec   : > { %v1780_v41 = vmul.f32 %v3708_v31, %v5558_v39  ;;  %v1781_v63 = vmul.f32 %v3708_v31, %v5563_v58  ;;  %v4770_v5 = vadd.f32 %v4327_v20, %v1881_v34  ;;  %v1634_v25 = vadd.f32 %v1618_v13, %v1598_v10 }
 0x1ed   : > { %v1709_v37 = vrot.slane %v1657_v32, 1  ;;  %v1335_v44 = vmul.f32 %v5495_v16, %v5535_v40  ;;  %v4774_v33 = vadd.f32 %v1577_v6, %v1485_v29  ;;  %v5565_v14 = vrot.slane %v5564_v11, 1  ;;  %v5572_v11 = vld [vmem:[#allocation41_spill] sm:$0xff] }
 0x1ee   : > { %v1832_v48 = vrot.slane %v1780_v41, 2  ;;  %v1833_v22 = vrot.slane %v1781_v63, 2  ;;  %v2494_v9 = vmul.f32 -1.442695, %v4770_v5  ;;  %v5568_v13 = vrot.slane %v5567_v3, 2  ;;  %v5570_v3 = vld [vmem:[#allocation56_spill] sm:$0xff] }
 0x1ef   : > { %v1428_v55 = vsel %vm1128_vm7, %v1425_v24, %v5565_v14  ;;  %v1710_v15 = vsel %vm1128_vm7, %v1708_v42, %v1709_v37  ;;  %v1351_v34 = vadd.f32 %v1335_v44, %v5566_v59  ;;  %v1619_v6 = vmul.f32 %v5489_v61, %v5563_v58 }
 0x1f0   : > { %v1552_v10 = vsel %vm1253_vm8, %v1549_v53, %v5568_v13  ;;  %v2996_v32 = vpop.eup %2995  ;;  %v1758_v23 = vadd.f32 %v1710_v15, %v1634_v25  ;;  %v1834_v29 = vsel %vm1253_vm8, %v1832_v48, %v1833_v22  ;;  %v5569_v41 = vrot.slane %v4237_v46, 1  ;;  %v5574_v15 = vld [vmem:[#allocation57_spill] sm:$0xff]  ;;  %v5576_v46 = vld [vmem:[#allocation42_spill] sm:$0xff] }
 0x1f1   : > { %v1967_v63 = vadd.f32 1.0, %v2996_v32  ;;  %2999 = vpow2.f32 %v2494_v9  ;;  %v1475_v42 = vadd.f32 %v1428_v55, %v1351_v34  ;;  %v1835_v59 = vrot.slane %v4270_v62, 2 }
 0x1f2   : > { %v1712_v24 = vsel %vm1128_vm7, %v1709_v37, %v5569_v41  ;;  %v1882_v44 = vadd.f32 %v1834_v29, %v1758_v23  ;;  %v1050_v53 = vmul.f32 %v3657_v43, %v3969_v56  ;;  %v5571_v25 = vrot.slane %v5570_v3, 1 }
 0x1f3   : > { %v5573_v48 = vrot.slane %v5572_v11, 1  ;;  %v5575_v13 = vrot.slane %v5574_v15, 2  ;;  %v5577_v21 = vrot.slane %v5576_v46, 2  ;;  %3001 = vrcp.f32 %v1967_v63 }
 0x1f4   : > { %v1599_v55 = vadd.f32 %v1552_v10, %v1475_v42  ;;  %v1836_v62 = vsel %vm1253_vm8, %v1833_v22, %v1835_v59  ;;  %v1336_v23 = vmul.f32 %v5495_v16, %v5558_v39  ;;  %v4808_v56 = vadd.f32 %v4327_v20, %v1882_v44  ;;  %v5578_v10 = vld [vmem:[#allocation58_spill] sm:$0xff] }
 0x1f5   : > { %v1146_v14 = vsel %vm1128_vm7, %v5573_v48, %v5571_v25  ;;  %v1271_v37 = vsel %vm1253_vm8, %v5577_v21, %v5575_v13  ;;  %v1375_v34 = vmul.f32 %v3683_v4, %v5558_v39  ;;  %v1376_v32 = vmul.f32 %v3683_v4, %v5563_v58 }
 0x1f6   : > { %v1191_v9 = vadd.f32 %v1146_v14, %v1050_v53  ;;  %v1635_v29 = vadd.f32 %v1619_v6, %v1599_v55  ;;  %v1499_v21 = vmul.f32 %v3687_v7, %v5558_v39  ;;  %v1500_v22 = vmul.f32 %v3687_v7, %v5563_v58  ;;  %v2998_v63 = vpop.eup %2997 }
 0x1f7   : > { %v1620_v41 = vmul.f32 %v5489_v61, %v5578_v10  ;;  %v2495_v42 = vmul.f32 -1.442695, %v4808_v56  ;;  %v1429_v44 = vrot.slane %v1375_v34, 1  ;;  %v1430_v53 = vrot.slane %v1376_v32, 1 }
 0x1f8   : > { %v1316_v59 = vadd.f32 %v1271_v37, %v1191_v9  ;;  %v2014_v25 = vmul.f32 %v2998_v63, %v4438_v19  ;;  %v1759_v11 = vadd.f32 %v1712_v24, %v1635_v29  ;;  %v1553_v48 = vrot.slane %v1499_v21, 2  ;;  %v5579_v21 = vld [vmem:[#allocation47_spill] sm:$0xff] }
 0x1f9   : > { %v1554_v6 = vrot.slane %v1500_v22, 2  ;;  %3003 = vpow2.f32 %v2495_v42  ;;  %v1431_v13 = vsel %vm1128_vm7, %v1429_v44, %v1430_v53  ;;  %v1659_v46 = vmul.f32 %v3705_v30, %v5578_v10 }
 0x1fa   : > { %v1352_v14 = vadd.f32 %v1336_v23, %v1316_v59  ;;  %2704 = vmatmul.mubr.f32.vlgmr.msra.gmra.mxu1 %v2014_v25  ;;  %v1883_v55 = vadd.f32 %v1836_v62, %v1759_v11  ;;  %v1660_v37 = vmul.f32 %v3705_v30, %v4251_v38  ;;  %v1783_v19 = vmul.f32 %v3708_v31, %v5578_v10  ;;  %v5582_v11 = vld [vmem:[#allocation48_spill] sm:$0xff] }
 0x1fb   : > { %v1555_v45 = vsel %vm1253_vm8, %v1553_v48, %v1554_v6  ;;  %v1713_v9 = vrot.slane %v1659_v46, 1  ;;  %v1784_v23 = vmul.f32 %v3708_v31, %v4251_v38  ;;  %v1051_v34 = vmul.f32 %v3657_v43, %v5535_v40 }
 0x1fc   : > { %v1476_v24 = vadd.f32 %v1431_v13, %v1352_v14  ;;  %v4835_v32 = vadd.f32 %v4327_v20, %v1883_v55  ;;  %v1714_v62 = vrot.slane %v1660_v37, 1  ;;  %v1837_v29 = vrot.slane %v1783_v19, 2 }
 0x1fd   : > { %v5580_v22 = vrot.slane %v5579_v21, 1  ;;  %v5581_v63 = vrot.slane %v5570_v3, 1  ;;  %v1838_v44 = vrot.slane %v1784_v23, 2  ;;  %v5583_v48 = vrot.slane %v5582_v11, 2 }
 0x1fe   : > { %v1600_v59 = vadd.f32 %v1555_v45, %v1476_v24  ;;  %v5584_v14 = vrot.slane %v5574_v15, 2  ;;  %v2496_v13 = vmul.f32 -1.442695, %v4835_v32  ;;  %v1715_v46 = vsel %vm1128_vm7, %v1713_v9, %v1714_v62  ;;  %v3000_v45 = vpop.eup %2999 }
 0x1ff   : > { %v1148_v42 = vsel %vm1128_vm7, %v5581_v63, %v5580_v22  ;;  %v1337_v55 = vmul.f32 %v5495_v16, %v5563_v58  ;;  %v5585_v3 = vrot.slane %v4225_v28, 1  ;;  %v1839_v24 = vsel %vm1253_vm8, %v1837_v29, %v1838_v44 }
 0x200   : > { %v1192_v25 = vadd.f32 %v1148_v42, %v1051_v34  ;;  %v1273_v40 = vsel %vm1253_vm8, %v5584_v14, %v5583_v48  ;;  %v1636_v19 = vadd.f32 %v1620_v41, %v1600_v59  ;;  %v5586_v15 = vrot.slane %v4234_v52, 2  ;;  %v3002_v22 = vpop.eup %3001  ;;  %v5588_v41 = vld [vmem:[#allocation64_spill] sm:$0xff] }
 0x201   : > { %v1433_v37 = vsel %vm1128_vm7, %v1430_v53, %v5585_v3  ;;  %v1968_v21 = vadd.f32 1.0, %v3000_v45  ;;  %3005 = vpow2.f32 %v2496_v13  ;;  %v1621_v9 = vmul.f32 %v5489_v61, %v4251_v38 }
 0x202   : > { %v1317_v23 = vadd.f32 %v1273_v40, %v1192_v25  ;;  %v1557_v34 = vsel %vm1253_vm8, %v1554_v6, %v5586_v15  ;;  %v5587_v58 = vrot.slane %v4274_v0, 1  ;;  %v1760_v53 = vadd.f32 %v1715_v46, %v1636_v19  ;;  %v5589_v6 = vld [vmem:[#allocation23_spill] sm:$0xff]  ;;  %v5591_v25 = vld [vmem:[#allocation32_spill] sm:$0xff] }
 0x203   : > { %v1840_v42 = vrot.slane %v5588_v41, 2  ;;  %v1052_v29 = vmul.f32 %v3657_v43, %v5558_v39  ;;  %v2015_v52 = vmul.f32 %v3002_v22, %v4683_v18  ;;  %3007 = vrcp.f32 %v1968_v21  ;;  %v5593_v0 = vld [vmem:[#allocation59_spill] sm:$0xff] }
 0x204   : > { %v1717_v28 = vsel %vm1128_vm7, %v1714_v62, %v5587_v58  ;;  %v1353_v63 = vadd.f32 %v1337_v55, %v1317_v23  ;;  %v5590_v59 = vrot.slane %v5589_v6, 1  ;;  %v5592_v11 = vrot.slane %v5591_v25, 1  ;;  %v5595_v62 = vld [vmem:[#allocation24_spill] sm:$0xff] }
 0x205   : > { %v5594_v14 = vrot.slane %v5593_v0, 2  ;;  %v5596_v40 = vrot.slane %v5595_v62, 2  ;;  %v1884_v46 = vadd.f32 %v1839_v24, %v1760_v53  ;;  %v1841_v3 = vsel %vm1253_vm8, %v1838_v44, %v1840_v42  ;;  %2706 = vmatprep.mubr.f32.mxu1 %v2015_v52  ;;  %v5597_v25 = vld [vmem:[#allocation28_spill] sm:$0xff] }
 0x206   : > { %v1151_v48 = vsel %vm1128_vm7, %v5592_v11, %v5590_v59  ;;  %v1477_v55 = vadd.f32 %v1433_v37, %v1353_v63  ;;  %v1338_v18 = vmul.f32 %v5495_v16, %v5578_v10  ;;  %v1378_v45 = vmul.f32 %v3683_v4, %v5578_v10  ;;  %v3004_v21 = vpop.eup %3003 }
 0x207   : > { %v1276_v13 = vsel %vm1253_vm8, %v5596_v40, %v5594_v14  ;;  %v1193_v39 = vadd.f32 %v1151_v48, %v1052_v29  ;;  %v1379_v19 = vmul.f32 %v3683_v4, %v4251_v38  ;;  %v1502_v23 = vmul.f32 %v3687_v7, %v5578_v10 }
 0x208   : > { %v4887_v15 = vadd.f32 %v4327_v20, %v1884_v46  ;;  %v1601_v37 = vadd.f32 %v1557_v34, %v1477_v55  ;;  %v1503_v44 = vmul.f32 %v3687_v7, %v4251_v38  ;;  %v1434_v58 = vrot.slane %v1378_v45, 1  ;;  %v5598_v45 = vld [vmem:[#allocation61_spill] sm:$0xff] }
 0x209   : > { %v1318_v24 = vadd.f32 %v1276_v13, %v1193_v39  ;;  %v1435_v22 = vrot.slane %v1379_v19, 1  ;;  %v1558_v53 = vrot.slane %v1502_v23, 2  ;;  %v1622_v63 = vmul.f32 %v5489_v61, %v4434_v54 }
 0x20a   : > { %v1969_v41 = vadd.f32 1.0, %v3004_v21  ;;  %v2497_v42 = vmul.f32 -1.442695, %v4887_v15  ;;  %v1637_v29 = vadd.f32 %v1621_v9, %v1601_v37  ;;  %v1559_v59 = vrot.slane %v1503_v44, 2  ;;  %v5600_v37 = vld [vmem:[#allocation62_spill] sm:$0xff] }
 0x20b   : > { %v1354_v52 = vadd.f32 %v1338_v18, %v1318_v24  ;;  %v1436_v6 = vsel %vm1128_vm7, %v1434_v58, %v1435_v22  ;;  %v1662_v34 = vmul.f32 %v3705_v30, %v4434_v54  ;;  %v1663_v11 = vmul.f32 %v3705_v30, %v5597_v25 }
 0x20c   : > { %3009 = vrcp.f32 %v1969_v41  ;;  %v1761_v48 = vadd.f32 %v1717_v28, %v1637_v29  ;;  %v1786_v14 = vmul.f32 %v3708_v31, %v4434_v54  ;;  %v1560_v62 = vsel %vm1253_vm8, %v1558_v53, %v1559_v59  ;;  %v5602_v29 = vld [vmem:[#allocation63_spill] sm:$0xff] }
 0x20d   : > { %v1478_v0 = vadd.f32 %v1436_v6, %v1354_v52  ;;  %3011 = vpow2.f32 %v2497_v42  ;;  %v1718_v9 = vrot.slane %v1662_v34, 1  ;;  %v1719_v40 = vrot.slane %v1663_v11, 1  ;;  %v5604_v34 = vld [vmem:[#allocation68_spill] sm:$0xff] }
 0x20e   : > { %v1885_v13 = vadd.f32 %v1841_v3, %v1761_v48  ;;  %v1787_v55 = vmul.f32 %v3708_v31, %v5597_v25  ;;  %v1842_v39 = vrot.slane %v1786_v14, 2  ;;  %v1339_v28 = vmul.f32 %v5495_v16, %v4251_v38  ;;  %v3006_v21 = vpop.eup %3005 }
 0x20f   : > { %v1602_v46 = vadd.f32 %v1560_v62, %v1478_v0  ;;  %v1720_v18 = vsel %vm1128_vm7, %v1718_v9, %v1719_v40  ;;  %v5599_v19 = vrot.slane %v5598_v45, 1  ;;  %v5601_v24 = vrot.slane %v5600_v37, 2 }
 0x210   : > { %v4914_v3 = vadd.f32 %v4327_v20, %v1885_v13  ;;  %v1843_v53 = vrot.slane %v1787_v55, 2  ;;  %v1623_v41 = vmul.f32 %v5489_v61, %v5597_v25  ;;  %v1970_v42 = vadd.f32 1.0, %v3006_v21  ;;  %v3008_v48 = vpop.eup %3007  ;;  %v5607_v55 = vld [vmem:[#allocation60_spill] sm:$0xff] }
 0x211   : > { %v1438_v23 = vsel %vm1128_vm7, %v1435_v22, %v5599_v19  ;;  %v1562_v44 = vsel %vm1253_vm8, %v1559_v59, %v5601_v24  ;;  %v1638_v58 = vadd.f32 %v1622_v63, %v1602_v46  ;;  %v1355_v52 = vadd.f32 %v1339_v28, %v5602_v29 }
 0x212   : > { %v5603_v6 = vrot.slane %v4491_v60, 1  ;;  %v1845_v11 = vrot.slane %v5604_v34, 2  ;;  %v2498_v59 = vmul.f32 -1.442695, %v4914_v3  ;;  %v1844_v14 = vsel %vm1253_vm8, %v1842_v39, %v1843_v53  ;;  %v5611_v39 = vld [vmem:[#allocation33_spill] sm:$0xff] }
 0x213   : > { %v1762_v0 = vadd.f32 %v1720_v18, %v1638_v58  ;;  %v1054_v63 = vmul.f32 %v3657_v43, %v5578_v10  ;;  %v2016_v62 = vmul.f32 %v3008_v48, %v4770_v5  ;;  %3013 = vrcp.f32 %v1970_v42  ;;  %v5609_v18 = vld [vmem:[#allocation66_spill] sm:$0xff] }
 0x214   : > { %v1722_v22 = vsel %vm1128_vm7, %v1719_v40, %v5603_v6  ;;  %v1479_v9 = vadd.f32 %v1438_v23, %v1355_v52  ;;  %v1846_v13 = vsel %vm1253_vm8, %v1843_v53, %v1845_v11  ;;  %3015 = vpow2.f32 %v2498_v59  ;;  %v5605_v40 = vld [vmem:[#allocation65_spill] sm:$0xff] }
 0x215   : > { %v1886_v60 = vadd.f32 %v1844_v14, %v1762_v0  ;;  %v5606_v46 = vrot.slane %v5605_v40, 1  ;;  %v5608_v28 = vrot.slane %v5607_v55, 1  ;;  %v5610_v19 = vrot.slane %v5609_v18, 2  ;;  %2707 = vmatmul.mubr.f32.gmra.mxu1 %v2016_v62 }
 0x216   : > { %v5612_v37 = vrot.slane %v5611_v39, 2  ;;  %v1603_v5 = vadd.f32 %v1562_v44, %v1479_v9  ;;  %v1340_v23 = vmul.f32 %v5495_v16, %v4434_v54  ;;  %v1381_v21 = vmul.f32 %v3683_v4, %v4434_v54 }
 0x217   : > { %v1156_v45 = vsel %vm1128_vm7, %v5608_v28, %v5606_v46  ;;  %v4944_v58 = vadd.f32 %v4327_v20, %v1886_v60  ;;  %v1382_v53 = vmul.f32 %v3683_v4, %v5597_v25  ;;  %v1505_v42 = vmul.f32 %v3687_v7, %v4434_v54 }
 0x218   : > { %v1281_v10 = vsel %vm1253_vm8, %v5612_v37, %v5610_v19  ;;  %v1195_v24 = vadd.f32 %v1156_v45, %v1054_v63  ;;  %v1506_v29 = vmul.f32 %v3687_v7, %v5597_v25  ;;  %v1639_v44 = vadd.f32 %v1623_v41, %v1603_v5 }
 0x219   : > { %v1439_v6 = vrot.slane %v1381_v21, 1  ;;  %v1624_v34 = vmul.f32 %v5489_v61, %v4446_v8  ;;  %v2499_v11 = vmul.f32 -1.442695, %v4944_v58  ;;  %v1440_v48 = vrot.slane %v1382_v53, 1  ;;  %v3010_v14 = vpop.eup %3009 }
 0x21a   : > { %v1320_v52 = vadd.f32 %v1281_v10, %v1195_v24  ;;  %v1563_v59 = vrot.slane %v1505_v42, 2  ;;  %v1564_v0 = vrot.slane %v1506_v29, 2  ;;  %v1763_v63 = vadd.f32 %v1722_v22, %v1639_v44  ;;  %v3012_v41 = vpop.eup %3011 }
 0x21b   : > { %v1665_v9 = vmul.f32 %v3705_v30, %v4446_v8  ;;  %v1666_v60 = vmul.f32 %v3705_v30, %v4506_v2  ;;  %v2017_v46 = vmul.f32 %v3010_v14, %v4808_v56  ;;  %3017 = vpow2.f32 %v2499_v11  ;;  %v5616_v11 = vld [vmem:[#allocation27_spill] sm:$0xff] }
 0x21c   : > { %v1356_v62 = vadd.f32 %v1340_v23, %v1320_v52  ;;  %v1441_v55 = vsel %vm1128_vm7, %v1439_v6, %v1440_v48  ;;  %v1565_v28 = vsel %vm1253_vm8, %v1563_v59, %v1564_v0  ;;  %v1971_v45 = vadd.f32 1.0, %v3012_v41 }
 0x21d   : > { %v1887_v19 = vadd.f32 %v1846_v13, %v1763_v63  ;;  %v1723_v37 = vrot.slane %v1665_v9, 1  ;;  %2709 = vmatprep.mubr.f32.mxu1 %v2017_v46  ;;  %v1724_v22 = vrot.slane %v1666_v60, 1  ;;  %v1789_v10 = vmul.f32 %v3708_v31, %v4446_v8  ;;  %v5613_v13 = vld [vmem:[#allocation25_spill] sm:$0xff] }
 0x21e   : > { %v1480_v39 = vadd.f32 %v1441_v55, %v1356_v62  ;;  %v4966_v30 = vmul.f32 %v3708_v31, %v4506_v2  ;;  %v1055_v56 = vmul.f32 %v3657_v43, %v4251_v38  ;;  %3019 = vrcp.f32 %v1971_v45 }
 0x21f   : > { %v4971_v5 = vadd.f32 %v4327_v20, %v1887_v19  ;;  %v5614_v23 = vrot.slane %v5613_v13, 1  ;;  %v5615_v21 = vrot.slane %v5605_v40, 1  ;;  %v1734_v42 = vrot.slane %v4756_v12, 1  ;;  %v5625_v13 = vld [vmem:[#allocation22_spill] sm:$0xff] }
 0x220   : > { %v1604_v24 = vadd.f32 %v1565_v28, %v1480_v39  ;;  %v1725_v29 = vsel %vm1128_vm7, %v1723_v37, %v1724_v22  ;;  %v1848_v31 = vrot.slane %v4966_v30, 2  ;;  %v1858_v38 = vrot.slane %v4759_v35, 2  ;;  %v3014_v63 = vpop.eup %3013  ;;  %v5619_v28 = vld [vmem:[#allocation31_spill] sm:$0xff]  ;;  %v5650_v35 = vld [vmem:[#allocation74_spill] sm:$0xff] }
 0x221   : > { %v1158_v53 = vsel %vm1128_vm7, %v5615_v21, %v5614_v23  ;;  %v2500_v52 = vmul.f32 -1.442695, %v4971_v5  ;;  %v5617_v59 = vrot.slane %v5616_v11, 2  ;;  %v5618_v14 = vrot.slane %v5609_v18, 2  ;;  %v3016_v46 = vpop.eup %3015 }
 0x222   : > { %v1196_v44 = vadd.f32 %v1158_v53, %v1055_v56  ;;  %v1640_v6 = vadd.f32 %v1624_v34, %v1604_v24  ;;  %v4990_v62 = vadd.f32 %v4749_v36, %v4774_v33  ;;  %v1847_v9 = vrot.slane %v1789_v10, 2  ;;  %v5621_v36 = vld [vmem:[#allocation67_spill] sm:$0xff]  ;;  %v5623_v56 = vld [vmem:[#allocation29_spill] sm:$0xff] }
 0x223   : > { %v1283_v40 = vsel %vm1253_vm8, %v5618_v14, %v5617_v59  ;;  %v1341_v41 = vmul.f32 %v5495_v16, %v5597_v25  ;;  %v2018_v55 = vmul.f32 %v3014_v63, %v4835_v32  ;;  %3021 = vpow2.f32 %v2500_v52  ;;  %v5630_v52 = vld [vmem:[#allocation30_spill] sm:$0xff] }
 0x224   : > { %v1321_v60 = vadd.f32 %v1283_v40, %v1196_v44  ;;  %v1764_v34 = vadd.f32 %v1725_v29, %v1640_v6  ;;  %v5620_v45 = vrot.slane %v5619_v28, 1  ;;  %v1972_v19 = vadd.f32 1.0, %v3016_v46  ;;  %v5628_v29 = vld [vmem:[#allocation26_spill] sm:$0xff] }
 0x225   : > { %v1849_v39 = vsel %vm1253_vm8, %v1847_v9, %v1848_v31  ;;  %v5622_v33 = vrot.slane %v5621_v36, 2  ;;  %2710 = vmatmul.mubr.f32.gmra.mxu1 %v2018_v55  ;;  %v1625_v25 = vmul.f32 %v5489_v61, %v4506_v2  ;;  %v1056_v32 = vmul.f32 %v3657_v43, %v4434_v54 }
 0x226   : > { %v1443_v18 = vsel %vm1128_vm7, %v1440_v48, %v5620_v45  ;;  %v1357_v37 = vadd.f32 %v1341_v41, %v1321_v60  ;;  %v1888_v30 = vadd.f32 %v1849_v39, %v1764_v34  ;;  %v5624_v24 = vrot.slane %v5623_v56, 1  ;;  %v5632_v34 = vld [vmem:[#allocation71_spill] sm:$0xff] }
 0x227   : > { %v1567_v10 = vsel %vm1253_vm8, %v1564_v0, %v5622_v33  ;;  %v5626_v48 = vrot.slane %v5625_v13, 1  ;;  %3023 = vrcp.f32 %v1972_v19  ;;  %v5627_v53 = vrot.slane %v4531_v1, 1  ;;  %v5633_v19 = vld [vmem:[#allocation78_spill] sm:$0xff]  ;;  %v5635_v13 = vld [vmem:[#allocation73_spill] sm:$0xff] }
 0x228   : > { %v1481_v21 = vadd.f32 %v1443_v18, %v1357_v37  ;;  %v5629_v44 = vrot.slane %v5628_v29, 2  ;;  %v5631_v6 = vrot.slane %v5630_v52, 2  ;;  %v5020_v43 = vadd.f32 %v4327_v20, %v1888_v30  ;;  %v3018_v63 = vpop.eup %3017  ;;  %v5634_v30 = vld [vmem:[#allocation75_spill] sm:$0xff]  ;;  %v5641_v52 = vld [vmem:[#allocation72_spill] sm:$0xff] }
 0x229   : > { %v1161_v23 = vsel %vm1128_vm7, %v5626_v48, %v5624_v24  ;;  %v1727_v0 = vsel %vm1128_vm7, %v1724_v22, %v5627_v53  ;;  %v1384_v11 = vmul.f32 %v3683_v4, %v4446_v8  ;;  %v1385_v59 = vmul.f32 %v3683_v4, %v4506_v2 }
 0x22a   : > { %v1286_v61 = vsel %vm1253_vm8, %v5631_v6, %v5629_v44  ;;  %v1197_v54 = vadd.f32 %v1161_v23, %v1056_v32  ;;  %v1605_v14 = vadd.f32 %v1567_v10, %v1481_v21  ;;  %v1342_v1 = vmul.f32 %v5495_v16, %v4446_v8  ;;  %v5637_v23 = vld [vmem:[#allocation76_spill] sm:$0xff] }
 0x22b   : > { %v1508_v22 = vmul.f32 %v3687_v7, %v4446_v8  ;;  %v1509_v40 = vmul.f32 %v3687_v7, %v4506_v2  ;;  %v2501_v20 = vmul.f32 -1.442695, %v5020_v43  ;;  %v1444_v60 = vrot.slane %v1384_v11, 1  ;;  %v3020_v39 = vpop.eup %3019 }
 0x22c   : > { %v1322_v9 = vadd.f32 %v1286_v61, %v1197_v54  ;;  %v1445_v41 = vrot.slane %v1385_v59, 1  ;;  %v1973_v46 = vadd.f32 1.0, %v3018_v63  ;;  %v1641_v55 = vadd.f32 %v1625_v25, %v1605_v14  ;;  %v3053_v61 = vld [vmem:[%s5282_s4] ss:$0 sm:$0xff] }
 0x22d   : > { %v1850_v4 = vrot.slane %v5632_v34, 2  ;;  %v1569_v28 = vrot.slane %v1509_v40, 2  ;;  %3025 = vpow2.f32 %v2501_v20  ;;  %v1852_v8 = vrot.slane %v5633_v19, 2 }
 0x22e   : > { %v1358_v45 = vadd.f32 %v1342_v1, %v1322_v9  ;;  %v1446_v18 = vsel %vm1128_vm7, %v1444_v60, %v1445_v41  ;;  %3027 = vrcp.f32 %v1973_v46  ;;  %v1765_v7 = vadd.f32 %v1727_v0, %v1641_v55  ;;  %v5639_v0 = vld [vmem:[#allocation69_spill] sm:$0xff]  ;;  %v5645_v9 = vld [vmem:[#allocation70_spill] sm:$0xff] }
 0x22f   : > { %v1851_v37 = vsel %vm1253_vm8, %v1848_v31, %v1850_v4  ;;  %v1568_v36 = vrot.slane %v1508_v22, 2  ;;  %v2019_v33 = vmul.f32 %v3020_v39, %v4887_v15  ;;  %v1853_v25 = vrot.slane %v5634_v30, 2  ;;  %v5644_v22 = vld [vmem:[#allocation77_spill] sm:$0xff] }
 0x230   : > { %v1482_v10 = vadd.f32 %v1446_v18, %v1358_v45  ;;  %v1343_v32 = vmul.f32 %v5495_v16, %v4506_v2  ;;  %v1889_v56 = vadd.f32 %v1851_v37, %v1765_v7  ;;  %v5636_v48 = vrot.slane %v5635_v13, 1  ;;  %v3022_v2 = vpop.eup %3021  ;;  %v3054_v13 = vld [vmem:[%s3554_s16 + $0x20] sm:$0xff] }
 0x231   : > { %v1570_v24 = vsel %vm1253_vm8, %v1568_v36, %v1569_v28  ;;  %v5638_v21 = vrot.slane %v5637_v23, 1  ;;  %v5640_v31 = vrot.slane %v5639_v0, 1  ;;  %2712 = vmatprep.mubr.f32.mxu1 %v2019_v33  ;;  %v1854_v44 = vsel %vm1253_vm8, %v1852_v8, %v1853_v25  ;;  %v3055_v23 = vld [vmem:[%s3554_s16 + $0x28] sm:$0xff] }
 0x232   : > { %v1606_v15 = vadd.f32 %v1570_v24, %v1482_v10  ;;  %v1359_v6 = vadd.f32 %v1343_v32, %v5641_v52  ;;  %v1735_v16 = vsel %vm1128_vm7, %v1733_v26, %v1734_v42  ;;  %v5060_v54 = vadd.f32 %v3053_v61, %v1889_v56 }
 0x233   : > { %v1730_v53 = vsel %vm1128_vm7, %v5638_v21, %v5636_v48  ;;  %v1448_v29 = vsel %vm1128_vm7, %v1445_v41, %v5640_v31  ;;  %v1768_v11 = vadd.f32 %v1735_v16, %v4691_v17  ;;  %v5642_v59 = vrot.slane %v4622_v27, 2 }
 0x234   : > { %v5643_v1 = vrot.slane %v4738_v57, 1  ;;  %v1974_v26 = vadd.f32 1.0, %v3022_v2  ;;  %v1642_v40 = vadd.f32 %v5644_v22, %v1606_v15  ;;  %v1483_v63 = vadd.f32 %v1448_v29, %v1359_v6  ;;  %v3024_v12 = vpop.eup %3023  ;;  %v3057_v22 = vld [vmem:[%s3554_s16 + $0x38] sm:$0xff] }
 0x235   : > { %v1859_v14 = vsel %vm1253_vm8, %v5642_v59, %v1858_v38  ;;  %v2502_v17 = vmul.f32 -1.442695, %v5060_v54  ;;  %v5646_v60 = vrot.slane %v5645_v9, 2  ;;  %v5647_v46 = vrot.slane %v4741_v49, 2 }
 0x236   : > { %v1737_v47 = vsel %vm1128_vm7, %v1734_v42, %v5643_v1  ;;  %v1892_v41 = vadd.f32 %v1859_v14, %v1768_v11  ;;  %3029 = vrcp.f32 %v1974_v26  ;;  %v1766_v42 = vadd.f32 %v1730_v53, %v1642_v40  ;;  %v3056_v53 = vld [vmem:[%s3554_s16 + $0x18] sm:$0xff] }
 0x237   : > { %v1769_v20 = vadd.f32 %v1737_v47, %v4990_v62  ;;  %v1572_v27 = vsel %vm1253_vm8, %v1569_v28, %v5646_v60  ;;  %v1861_v57 = vsel %vm1253_vm8, %v1858_v38, %v5647_v46  ;;  %v2020_v62 = vmul.f32 %v3024_v12, %v4914_v3 }
 0x238   : > { %v1607_v55 = vadd.f32 %v1572_v27, %v1483_v63  ;;  %3031 = vpow2.f32 %v2502_v17  ;;  %v5648_v4 = vrot.slane %v4728_v50, 1  ;;  %v5649_v45 = vmov %v5636_v48  ;;  %v3058_v63 = vld [vmem:[%s3554_s16 + $0x40] sm:$0xff]  ;;  %v3059_v17 = vld [vmem:[%s3554_s16 + $0x30] sm:$0xff] }
 0x239   : > { %v1893_v34 = vadd.f32 %v1861_v57, %v1769_v20  ;;  %v5090_v18 = vadd.f32 %v3053_v61, %v1892_v41  ;;  %v1890_v49 = vadd.f32 %v1854_v44, %v1766_v42  ;;  %2713 = vmatmul.mubr.f32.gmra.mxu1 %v2020_v62  ;;  %v5651_v37 = vrot.slane %v4731_v51, 2 }
 0x23a   : > { %v1732_v28 = vsel %vm1128_vm7, %v5649_v45, %v5648_v4  ;;  %v1643_v19 = vadd.f32 %v5650_v35, %v1607_v55  ;;  %v3026_v7 = vpop.eup %3025  ;;  %v2222_v48 = vrot.slane %v3054_v13, 1  ;;  %v2224_v21 = vrot.slane %v3055_v23, 1  ;;  %v3061_v4 = vld [vmem:[%s3554_s16 + $0x58] sm:$0xff] }
 0x23b   : > { %v5093_v38 = vadd.f32 %v3053_v61, %v1893_v34  ;;  %v2505_v8 = vmul.f32 -1.442695, %v5090_v18  ;;  %v1913_v39 = vadd.f32 %v3053_v61, %v1890_v49  ;;  %v1856_v36 = vsel %vm1253_vm8, %v1853_v25, %v5651_v37  ;;  %v3028_v33 = vpop.eup %3027  ;;  %v3060_v34 = vld [vmem:[%s3554_s16 + $0x50] sm:$0xff] }
 0x23c   : > { %v1767_v3 = vadd.f32 %v1732_v28, %v1643_v19  ;;  %v1975_v10 = vadd.f32 1.0, %v3026_v7  ;;  %v2021_v56 = vmul.f32 %v3028_v33, %v4944_v58  ;;  %v2221_v0 = vrot.slane %v3056_v53, 1  ;;  %v3062_v28 = vld [vmem:[%s3554_s16 + $0x48] sm:$0xff] }
 0x23d   : > { %v2506_v50 = vmul.f32 -1.442695, %v5093_v38  ;;  %3033 = vpow2.f32 %v2505_v8  ;;  %v2503_v30 = vmul.f32 -1.442695, %v1913_v39  ;;  %v5105_v31 = vsel %vm1128_vm7, %v2222_v48, %v2224_v21  ;;  %v3063_v19 = vld [vmem:[%s3554_s16 + $0x68] sm:$0xff]  ;;  %v3070_v21 = vld [vmem:[%s3554_s16 + $0xa0] sm:$0xff] }
 0x23e   : > { %v1891_v32 = vadd.f32 %v1856_v36, %v1767_v3  ;;  %2715 = vmatprep.mubr.f32.mxu1 %v2021_v56  ;;  %v5109_v44 = vsel %vm1128_vm7, %v2221_v0, %v2222_v48  ;;  %v2227_v40 = vrot.slane %v3057_v22, 1  ;;  %v2229_v20 = vrot.slane %v3058_v63, 1  ;;  %v3065_v3 = vld [vmem:[%s3554_s16 + $0x60] sm:$0xff]  ;;  %v3069_v48 = vld [vmem:[%s3554_s16 + $0x98] sm:$0xff] }
 0x23f   : > { %3035 = vpow2.f32 %v2506_v50  ;;  %v2226_v9 = vrot.slane %v3059_v17, 1  ;;  %v2232_v62 = vrot.slane %v3060_v34, 1  ;;  %v2234_v45 = vrot.slane %v3061_v4, 1  ;;  %v3066_v36 = vld [vmem:[%s3554_s16 + $0x80] sm:$0xff] }
 0x240   : > { %3037 = vrcp.f32 %v1975_v10  ;;  %v1914_v24 = vadd.f32 %v3053_v61, %v1891_v32  ;;  %v5117_v60 = vsel %vm1128_vm7, %v2227_v40, %v2229_v20  ;;  %v2237_v8 = vrot.slane %v3063_v19, 1  ;;  %v3067_v10 = vld [vmem:[%s3554_s16 + $0x88] sm:$0xff]  ;;  %v3068_v32 = vld [vmem:[%s3554_s16 + $0x78] sm:$0xff] }
 0x241   : > { %3039 = vpow2.f32 %v2503_v30  ;;  %v5121_v12 = vsel %vm1128_vm7, %v2226_v9, %v2227_v40  ;;  %v2235_v49 = vsel %vm1128_vm7, %v2232_v62, %v2234_v45  ;;  %v2236_v50 = vrot.slane %v3065_v3, 1 }
 0x242   : > { %v2504_v51 = vmul.f32 -1.442695, %v1914_v24  ;;  %v2242_v33 = vrot.slane %v3066_v36, 1  ;;  %v2244_v30 = vrot.slane %v3067_v10, 1  ;;  %v2241_v56 = vrot.slane %v3068_v32, 1 }
 0x243   : > { %v3030_v25 = vpop.eup %3029  ;;  %v2238_v37 = vsel %vm1128_vm7, %v2236_v50, %v2237_v8  ;;  %v2247_v23 = vrot.slane %v3069_v48, 1  ;;  %v3075_v50 = vld [vmem:[%s3554_s16 + $0xc8] sm:$0xff] }
 0x244   : > { %3041 = vpow2.f32 %v2504_v51  ;;  %v2022_v58 = vmul.f32 %v3030_v25, %v4971_v5  ;;  %v2243_v13 = vsel %vm1128_vm7, %v2241_v56, %v2242_v33  ;;  %v2249_v51 = vrot.slane %v3070_v21, 1  ;;  %v3071_v25 = vld [vmem:[%s3554_s16 + $0x90] sm:$0xff] }
 0x245   : > { %v3032_v29 = vpop.eup %3031  ;;  %v2246_v53 = vrot.slane %v3071_v25, 1 }
 0x246   : > { %v1976_v15 = vadd.f32 1.0, %v3032_v29  ;;  %2716 = vmatmul.mubr.f32.gmra.mxu1 %v2022_v58  ;;  %v2250_v0 = vsel %vm1128_vm7, %v2247_v23, %v2249_v51  ;;  %v3072_v58 = vld [vmem:[%s3554_s16 + $0xb0] sm:$0xff] }
 0x247   : > { %v2248_v29 = vsel %vm1128_vm7, %v2246_v53, %v2247_v23 }
 0x248   : > { %3043 = vrcp.f32 %v1976_v15  ;;  %v2252_v15 = vrot.slane %v3072_v58, 1 }
 0x24a   : > { %v3034_v52 = vpop.eup %3033 }
 0x24b   : > { %v1979_v16 = vadd.f32 1.0, %v3034_v52  ;;  %v3073_v52 = vld [vmem:[%s3554_s16 + $0xb8] sm:$0xff] }
 0x24c   : > { %v3036_v6 = vpop.eup %3035 }
 0x24d   : > { %v3038_v2 = vpop.eup %3037  ;;  %v1980_v14 = vadd.f32 1.0, %v3036_v6  ;;  %3045 = vrcp.f32 %v1979_v16  ;;  %v2254_v6 = vrot.slane %v3073_v52, 1  ;;  %v3074_v16 = vld [vmem:[%s3554_s16 + $0xa8] sm:$0xff] }
 0x24e   : > { %v3040_v61 = vpop.eup %3039  ;;  %v2023_v11 = vmul.f32 %v3038_v2, %v5020_v43  ;;  %v2251_v2 = vrot.slane %v3074_v16, 1 }
 0x24f   : > { %v1977_v59 = vadd.f32 1.0, %v3040_v61  ;;  %v5148_v61 = vsel %vm1128_vm7, %v2252_v15, %v2254_v6 }
 0x250   : > { %2718 = vmatprep.mubr.f32.mxu1 %v2023_v11  ;;  %v5151_v11 = vsel %vm1128_vm7, %v2251_v2, %v2252_v15 }
 0x251   : > { %v3042_v5 = vpop.eup %3041  ;;  %3047 = vrcp.f32 %v1977_v59  ;;  %v5157_v59 = vld [vmem:[%s5284_s6] ss:$0 sm:$0xff] }
 0x252   : > { %v1978_v1 = vadd.f32 1.0, %v3042_v5  ;;  %3049 = vrcp.f32 %v1980_v14 }
 0x254   : > { %3051 = vrcp.f32 %v1978_v1 }
 0x255   : > { %v3044_v47 = vpop.eup %3043 }
 0x256   : > { %v2024_v26 = vmul.f32 %v3044_v47, %v5060_v54 }
 0x258   : > { %2719 = vmatmul.mubr.f32.gmra.mxu1 %v2024_v26 }
 0x25a   : > { %v3046_v43 = vpop.eup %3045 }
 0x25b   : > { %v2027_v54 = vmul.f32 %v3046_v43, %v5090_v18  ;;  %v2231_v18 = vrot.slane %v3062_v28, 1 }
 0x25d   : > { %v2233_v35 = vsel %vm1128_vm7, %v2231_v18, %v2232_v62 }
 0x25e   : > { %v3048_v27 = vpop.eup %3047 }
 0x25f   : > { %v2025_v41 = vmul.f32 %v3048_v27, %v1913_v39  ;;  %v3050_v46 = vpop.eup %3049  ;;  %v3064_v39 = vld [vmem:[%s3554_s16 + $0x70] sm:$0xff] }
 0x260   : > { %v2028_v55 = vmul.f32 %v3050_v46, %v5093_v38  ;;  %v2239_v38 = vrot.slane %v3064_v39, 1 }
 0x261   : > { %v3052_v57 = vpop.eup %3051  ;;  %2721 = vmatprep.mubr.f32.mxu1 %v2025_v41 }
 0x262   : > { %v2026_v42 = vmul.f32 %v3052_v57, %v1914_v24  ;;  %v2240_v7 = vsel %vm1128_vm7, %v2237_v8, %v2239_v38  ;;  %v2245_v24 = vsel %vm1128_vm7, %v2242_v33, %v2244_v30  ;;  %v3077_v30 = vld [vmem:[%s3554_s16 + $0xc0] sm:$0xff] }
 0x263   : > { %v2256_v32 = vrot.slane %v3077_v30, 1 }
 0x264   : > { %2722 = vmatmul.mubr.f32.gmra.mxu1 %v2026_v42 }
 0x265   : > { %2724 = vmatprep.mubr.f32.mxu1 %v2027_v54 }
 0x268   : > { %2725 = vmatmul.mubr.f32.gmra.mxu1 %v2028_v55 }
 0x2ba   : > { %v2705_v14 = vpop.f32.mrf.mxu1 }
 0x2bb   : > { %v2124_v5 = vadd.f32 %v2705_v14, %v5157_v59 }
 0x2bc   : > { %v2118_v1 = vpop.f32.mrf.mxu1 }
 0x2bd   : > { %v2278_v47 = vadd.f32 %v5105_v31, %v2124_v5  ;;  %v2119_v26 = vadd.f32 %v5157_v59, %v2118_v1 }
 0x2bf   : > { %2294 = vst [vmem:[%s5164_s12 + $0x8] sm:$0xff] %v2278_v47  ;;  %v2277_v22 = vadd.f32 %v5109_v44, %v2119_v26 }
 0x2c1   : > { %2293 = vst [vmem:[%s5164_s12] sm:$0xff] %v2277_v22 }
 0x2d5   : > { %v2708_v40 = vpop.f32.mrf.mxu1 }
 0x2d6   : > { %v2134_v63 = vadd.f32 %v2708_v40, %v5157_v59 }
 0x2d7   : > { %v2128_v20 = vpop.f32.mrf.mxu1 }
 0x2d8   : > { %v2280_v31 = vadd.f32 %v5117_v60, %v2134_v63  ;;  %v2129_v43 = vadd.f32 %v5157_v59, %v2128_v20 }
 0x2da   : > { %2296 = vst [vmem:[%s5164_s12 + $0x18] sm:$0xff] %v2280_v31  ;;  %v2279_v17 = vadd.f32 %v5121_v12, %v2129_v43 }
 0x2dc   : > { %2295 = vst [vmem:[%s5164_s12 + $0x10] sm:$0xff] %v2279_v17 }
 0x2e5   : > { %v2711_v9 = vpop.f32.mrf.mxu1 }
 0x2e6   : > { %v2144_v27 = vadd.f32 %v2711_v9, %v5157_v59 }
 0x2e7   : > { %v2138_v44 = vpop.f32.mrf.mxu1 }
 0x2e8   : > { %v2282_v41 = vadd.f32 %v2235_v49, %v2144_v27  ;;  %v2139_v46 = vadd.f32 %v5157_v59, %v2138_v44 }
 0x2ea   : > { %2298 = vst [vmem:[%s5164_s12 + $0x28] sm:$0xff] %v2282_v41  ;;  %v2281_v57 = vadd.f32 %v2233_v35, %v2139_v46 }
 0x2ec   : > { %2297 = vst [vmem:[%s5164_s12 + $0x20] sm:$0xff] %v2281_v57 }
 0x2f9   : > { %v2714_v60 = vpop.f32.mrf.mxu1 }
 0x2fa   : > { %v2154_v54 = vadd.f32 %v2714_v60, %v5157_v59 }
 0x2fb   : > { %v2148_v42 = vpop.f32.mrf.mxu1 }
 0x2fc   : > { %v2284_v55 = vadd.f32 %v2240_v7, %v2154_v54  ;;  %v2149_v12 = vadd.f32 %v5157_v59, %v2148_v42  ;;  %v2257_v7 = vrot.slane %v3075_v50, 1 }
 0x2fe   : > { %2300 = vst [vmem:[%s5164_s12 + $0x38] sm:$0xff] %v2284_v55  ;;  %v2283_v34 = vadd.f32 %v2238_v37, %v2149_v12  ;;  %v3076_v37 = vld [vmem:[%s3554_s16 + $0xd0] sm:$0xff]  ;;  %s2326_s16 = sshll.u32 %s5164_s12, 4  ;;  %v2258_v53 = vsel %vm1128_vm7, %v2256_v32, %v2257_v7  ;;  %s5212_s16 = int_to_ptr.vmem [resolvable:$true] %s2326_s16 }
 0x2ff   : > { %v2259_v36 = vrot.slane %v3076_v37, 1  ;;  %s3184_s27 = scalar_lea.vmem %s5212_s16, 2048  ;;  %p3191_p11 = scmp.lt.s32.totalorder %s5212_s16, %s3189_s3 }
 0x300   : > { %2299 = vst [vmem:[%s5164_s12 + $0x30] sm:$0xff] %v2283_v34  ;;  %p3185_p1 = scmp.ne.s32.totalorder %s5212_s16, %s3184_s27  ;;  %p3192_p6 = scmp.lt.s32.totalorder %s3190_s5, %s3184_s27 }
 0x301   : > { %v2260_v23 = vsel %vm1128_vm7, %v2257_v7, %v2259_v36 }
 0x302   : > { %p3186_p7 = pnand %p3185_p1, %p5655_p3  ;;  %p3193_p13 = por %p3192_p6, %p3191_p11 }
 0x304   : > { %p3187_p9 = pneg %p3186_p7 }
 0x306   : > { %v2717_v62 = vpop.f32.mrf.mxu1  ;;  %p3194_p12 = pnand %p3193_p13, %p3187_p9 }
 0x307   : > { %v2164_v4 = vadd.f32 %v2717_v62, %v5157_v59 }
 0x308   : > { %v2158_v45 = vpop.f32.mrf.mxu1 }
 0x309   : > { %v2286_v28 = vadd.f32 %v2245_v24, %v2164_v4  ;;  %v2159_v18 = vadd.f32 %v5157_v59, %v2158_v45 }
 0x30b   : > { %2302 = vst [vmem:[%s5164_s12 + $0x48] sm:$0xff] %v2286_v28  ;;  %v2285_v49 = vadd.f32 %v2243_v13, %v2159_v18 }
 0x30d   : > { %2301 = vst [vmem:[%s5164_s12 + $0x40] sm:$0xff] %v2285_v49 }
 0x318   : > { %v2720_v35 = vpop.f32.mrf.mxu1 }
 0x319   : > { %v2174_v19 = vadd.f32 %v2720_v35, %v5157_v59 }
 0x31a   : > { %v2168_v8 = vpop.f32.mrf.mxu1 }
 0x31b   : > { %v2288_v39 = vadd.f32 %v2250_v0, %v2174_v19  ;;  %v2169_v38 = vadd.f32 %v5157_v59, %v2168_v8 }
 0x31d   : > { %2304 = vst [vmem:[%s5164_s12 + $0x58] sm:$0xff] %v2288_v39  ;;  %v2287_v3 = vadd.f32 %v2248_v29, %v2169_v38 }
 0x31f   : > { %2303 = vst [vmem:[%s5164_s12 + $0x50] sm:$0xff] %v2287_v3 }
 0x324   : > { %v2723_v33 = vpop.f32.mrf.mxu1 }
 0x325   : > { %v2184_v10 = vadd.f32 %v2723_v33, %v5157_v59 }
 0x326   : > { %v2178_v56 = vpop.f32.mrf.mxu1 }
 0x327   : > { %v2290_v24 = vadd.f32 %v5148_v61, %v2184_v10  ;;  %v2179_v13 = vadd.f32 %v5157_v59, %v2178_v56 }
 0x328   : > { %v2726_v48 = vpop.f32.mrf.mxu1 }
 0x329   : > { %2306 = vst [vmem:[%s5164_s12 + $0x68] sm:$0xff] %v2290_v24  ;;  %v2289_v21 = vadd.f32 %v5151_v11, %v2179_v13  ;;  %v2194_v51 = vadd.f32 %v2726_v48, %v5157_v59 }
 0x32a   : > { %v2188_v25 = vpop.f32.mrf.mxu1 }
 0x32b   : > { %2305 = vst [vmem:[%s5164_s12 + $0x60] sm:$0xff] %v2289_v21  ;;  %v2292_v0 = vadd.f32 %v2260_v23, %v2194_v51  ;;  %v2189_v29 = vadd.f32 %v5157_v59, %v2188_v25 }
 0x32d   : > { %2308 = vst [vmem:[%s5164_s12 + $0x78] sm:$0xff] %v2292_v0  ;;  %v2291_v58 = vadd.f32 %v2258_v53, %v2189_v29 }
 0x32f   : > { %2307 = vst [vmem:[%s5164_s12 + $0x70] sm:$0xff] %v2291_v58 }
 0x330   : > { %3197 = shalt.err (!%p3194_p12)
}
 0x331   : > { %s3198_s20 = scalar_lea.hbm %s5210_s18, 2048  ;;  %s3202_s15 = scalar_lea.hbm %s5654_s17, 8192 }
 0x332   : > { %p3199_p0 = scmp.ne.s32.totalorder %s5210_s18, %s3198_s20  ;;  %p3203_p5 = scmp.lt.s32.totalorder %s5210_s18, %s5654_s17 }
 0x333   : > { %p3204_p8 = scmp.lt.s32.totalorder %s3202_s15, %s3198_s20 }
 0x334   : > { %p3200_p2 = pnand %p3199_p0, %p5655_p3 }
 0x335   : > { %p3205_p10 = por %p3204_p8, %p3203_p5 }
 0x336   : > { %p3201_p4 = pneg %p3200_p2 }
 0x338   : > { %p3206_p1 = pnand %p3205_p10, %p3201_p4 }
 0x33a   : > { %3209 = shalt.err (!%p3206_p1)
}
 0x33b   : > { %s3323_s7 = smov 128   ;;  %s3324_s8 = smov 8  }
 0x33c   : > { %2744 = dma.vmem_to_hbm [thread:$0]  (%p5655_p3), %s5212_s16, 2048, %s5210_s18, %s5218_s24, %s3323_s7, %s3323_s7, %s3324_s8  }
 0x33d PF: > { %s5656_s14 = sld [smem:[#allocation15_spill]]  ;;  %p2771_p7 = scmp.ge.s32.totalorder %s3312_s11, 2 }
 0x33e   : > { %s5657_s19 = sld [smem:[#allocation19_spill]] }
 0x343   : > { %s2341_s27 = sand.u32 1, %s5656_s14  }
 0x344   : > { %p5658_p9 = scmp.ne.s32.totalorder %s5657_s19, 0  ;;  %s2342_s22 = scalar_lea.sflag [#allocation4], %s2341_s27 }
 0x346   : > { %p2761_p11 = pnand %p2771_p7, %p5658_p9 }
 0x348   : > { %p2762_p6 = pneg %p2761_p11 }
 0x34a   : > { %3267 = dma.done.wait (%p2762_p6), %s2342_s22, 2048  }
 0x34b   : > { %3269 = vsyncadd (%p2762_p6), %s2342_s22, 4294965248  ;;  %s25_s11 = sadd.s32 1, %s3312_s11   ;;  %s5659_s30 = sld [smem:[#allocation17_spill]] }
 0x34c   : > { %p22_p13 = scmp.ge.s32.totalorder %s25_s11, 6   ;;  %s5660_s9 = sld [smem:[#allocation20_spill]] }
 0x34d   : > { %s5661_s16 = sld [smem:[#allocation21_spill]]  ;;  %s5662_s24 = smov %s3276_s25 }
 0x34e   : > { %s5663_s25 = smov %s3280_s26  ;;  %s5664_s26 = smov %s3518_s1 }
 0x34f   : > { %s5665_s27 = smov %s3288_s28  ;;  %s5666_s28 = smov %s3292_s29 }
 0x350   : > { %s5667_s29 = smov %s3513_s13  ;;  %s5668_s8 = smov %s3308_s10 }
 0x351   :  { %24 = sbr.rel (!%p22_p13) target bundleno = 16 (0x10), region = 106 }
 0x353   : > { %s5669_s10 = smov %s5661_s16 }
 0x356   :  { %2347 = vsyncpa [#allocation3], 1 }
 0x357   :  { %2349 = vsyncpa [#allocation3 + $0x1], 1 }
 0x358   :  { %2350 = vsyncpa [#allocation6], 1 }
 0x359   :  { %2351 = vsyncpa [#allocation9], 1 }
 0x35a   :  { %2352 = vsyncpa [#allocation4], 1 }
 0x35b   :  { %2354 = vsyncpa [#allocation4 + $0x1], 1 }

</bundles_post_ra>
